<compile_context>
chip_gen: v6e
topology: v6e:2x2x1
jax: 0.10.0
libtpu: 0.0.40
codegen_flags: <defaults>
</compile_context>

<pallas_src>
import functools
import math

import jax
import jax.numpy as jnp
from jax.experimental import pallas as pl
from jax.experimental.pallas import tpu as pltpu


# ----------------------------------------------------------------------------
# In-kernel math helpers (f32).
# ----------------------------------------------------------------------------
def _layer_norm(x, gamma, beta, eps):
    # x: [S, H] f32, gamma/beta: [1, H] f32
    mean = jnp.mean(x, axis=-1, keepdims=True)
    var = jnp.mean((x - mean) ** 2, axis=-1, keepdims=True)
    inv = jax.lax.rsqrt(var + eps)
    return (x - mean) * inv * gamma + beta


def _gelu_exact(x):
    # torch.nn.GELU() default: exact erf-based GELU (f32 input).
    return 0.5 * x * (1.0 + jax.lax.erf(x * jnp.float32(0.7071067811865476)))


# ----------------------------------------------------------------------------
# VMEM budgeting / tile selection (generation-aware).
# ----------------------------------------------------------------------------
def _vmem_capacity_bytes():
    try:
        info = pltpu.get_tpu_info()
        cap = getattr(info, "vmem_capacity_bytes", None)
        if cap:
            return int(cap)
    except Exception:
        pass
    return 64 * 2 ** 20          # conservative default (v7x per-TC VMEM)


def _vmem_bytes(S, H, tS, tI):
    """Rough peak-VMEM estimate for one grid step (pipeline buffers + scratch
    + transient activation values)."""
    lane = lambda n: ((n + 127) // 128) * 128
    sub = lambda n: ((n + 7) // 8) * 8
    Hp, Sp, Ip = lane(H), lane(S), lane(tI)
    tSs, Ss, Hs, tIs = sub(tS), sub(S), sub(H), sub(tI)
    f4, b2 = 4, 2
    est = 0
    est += 2 * tSs * Hp * f4                    # xq blocks (f32, double-buffered)
    est += 2 * Ss * Hp * b2                     # xkv blocks (bf16)
    est += 4 * Hs * Hp * b2                     # wq/wk/wv/wao (single-buffered)
    est += 2 * (Hs * Ip + tIs * Hp) * b2        # wi / wo tiles (double-buffered)
    est += 2 * tSs * Hp * f4                    # output blocks
    est += 2 * Ss * Hp * b2                     # k_sc + v_sc scratch
    est += tSs * Hp * (2 * b2 + 2 * f4)         # q_sc, attn_bf, attn, acc scratch
    est += tSs * Hp * f4 + Ss * Hp * f4         # q / kv f32 GEMM transients
    est += 3 * tSs * Sp * f4                    # per-head scores / exp / probs
    est += 2 * tSs * Ip * f4                    # FFN intermediate + GELU
    est += 24 * Hp * f4 + 4 * Ip * f4           # biases / LN params
    return est


def _select_tiles(B, S, H, I, vmem_budget):
    ts_cands = sorted({c for c in range(8, S + 1, 8) if S % c == 0} | {S},
                      reverse=True)
    cap_ts = [c for c in ts_cands if c <= 512] or [min(ts_cands)]
    # v7x megacore: with a single batch element keep >= 2 parallel seq tiles
    # so both TensorCores get work (batch axis covers it when B >= 2).
    if B == 1:
        smaller = [c for c in cap_ts if c <= S // 2]
        if smaller:
            cap_ts = smaller
    if I % 128 == 0:
        ti_cands = sorted({c for c in range(128, I + 1, 128) if I % c == 0},
                          reverse=True)
    else:
        ti_cands = [I]

    # Prefer large sequence tiles first (fewer wi/wo re-fetches), then the
    # largest FFN tile (ideally tI == I on 128 MiB parts) that fits the budget.
    choice = None
    for ts in cap_ts:
        for ti in ti_cands:
            if _vmem_bytes(S, H, ts, ti) <= vmem_budget:
                choice = (ts, ti)
                break
        if choice is not None:
            break
    if choice is None:
        choice = (cap_ts[-1], ti_cands[-1])
    return choice


def _const_spec(shape):
    """BlockSpec for weights/params whose block index never changes.
    Single-buffered (the second pipeline buffer would be pure VMEM waste)."""
    zeros = tuple(0 for _ in shape)
    index_map = lambda b, s, i, _z=zeros: _z
    try:
        return pl.BlockSpec(shape, index_map, pipeline_mode=pl.Buffered(1))
    except Exception:
        return pl.BlockSpec(shape, index_map)


# ----------------------------------------------------------------------------
# Kernel: one BertLayer (attention + LN1 + FFN + LN2) for one (b, s, i) step.
# Grid = (B, S // tS, I // tI); the i axis tiles the FFN intermediate dim.
# ----------------------------------------------------------------------------
def bert_layer_kernel(
    xq_ref, xkv_ref,
    wq_ref, bq_ref, wk_ref, bk_ref, wv_ref, bv_ref,
    wao_ref, bao_ref, g1_ref, b1_ref,
    wi_ref, bi_ref, wo_ref, bo_ref, g2_ref, b2_ref,
    out_ref,
    k_sc, v_sc, q_sc, attn_sc, attn_bf_sc, acc_sc,
    *,
    num_heads: int,
    head_dim: int,
    layer_norm_eps: float,
    cache_kv: bool,
):
    s_idx = pl.program_id(1)
    i_idx = pl.program_id(2)
    eps = jnp.float32(layer_norm_eps)
    bf16 = jnp.bfloat16
    d = head_dim

    if cache_kv:
        # K/V reused across all query-row tiles of this batch element.
        kv_fresh = jnp.logical_and(i_idx == 0, s_idx == 0)
    else:
        kv_fresh = i_idx == 0

    # ---- K/V projections: 2D GEMMs over the full sequence, cached in VMEM ---
    @pl.when(kv_fresh)
    def _project_kv():
        xkv = xkv_ref[0]                                   # [S, H] bf16
        k = jnp.dot(xkv, wk_ref[...],
                    preferred_element_type=jnp.float32) + bk_ref[...]
        v = jnp.dot(xkv, wv_ref[...],
                    preferred_element_type=jnp.float32) + bv_ref[...]
        k_sc[...] = k.astype(bf16)
        v_sc[...] = v.astype(bf16)

    # ---- Attention + first LayerNorm: only on the first FFN tile ------------
    @pl.when(i_idx == 0)
    def _attention():
        xq = xq_ref[0]                                     # [tS, H] f32
        tS, H = xq.shape

        # Q projection as one full-width 2D GEMM; 1/sqrt(d) folded in once.
        q = jnp.dot(xq.astype(bf16), wq_ref[...],
                    preferred_element_type=jnp.float32) + bq_ref[...]
        q = q * jnp.float32(1.0 / math.sqrt(float(d)))
        q_sc[...] = q.astype(bf16)

        # Per-head attention (statically unrolled): heads addressed via static
        # lane/sublane slices, so the peak f32 transient is [tS, S] per head
        # (not [h, tS, S]) and no reshapes/transposes/broadcasts are needed.
        attn = jnp.zeros((tS, H), jnp.float32)
        for hh in range(num_heads):
            sl = slice(hh * d, (hh + 1) * d)
            q_h = q_sc[:, sl]                              # [tS, d] bf16
            k_h = k_sc[:, sl]                              # [S,  d] bf16
            v_h = v_sc[:, sl]                              # [S,  d] bf16

            scores = jnp.einsum('qd,kd->qk', q_h, k_h,
                                preferred_element_type=jnp.float32)  # [tS, S]
            m = jnp.max(scores, axis=-1, keepdims=True)
            e = jnp.exp(scores - m)
            denom = jnp.sum(e, axis=-1, keepdims=True)
            probs = e * pl.reciprocal(denom, approx=True)  # dropout = identity

            ctx_h = jnp.dot(probs.astype(bf16), v_h,
                            preferred_element_type=jnp.float32)      # [tS, d]
            # Attention-output projection: contract this head against the
            # matching [d, H] rows of the 2D W_ao and accumulate in f32.
            attn = attn + jnp.dot(ctx_h.astype(bf16), wao_ref[sl, :],
                                  preferred_element_type=jnp.float32)

        attn = attn + bao_ref[...]
        # BertSelfOutput: residual add + LayerNorm (f32).
        attn = _layer_norm(attn + xq, g1_ref[...], b1_ref[...], eps)

        attn_sc[...] = attn
        attn_bf_sc[...] = attn.astype(bf16)
        acc_sc[...] = jnp.zeros_like(acc_sc)

    # ---- FFN: one tile of the intermediate dimension per grid step ----------
    inter = jnp.dot(attn_bf_sc[...], wi_ref[...],
                    preferred_element_type=jnp.float32) + bi_ref[...]
    inter = _gelu_exact(inter)                             # [tS, tI] f32
    acc_sc[...] += jnp.dot(inter.astype(bf16), wo_ref[...],
                           preferred_element_type=jnp.float32)       # [tS, H]

    # ---- Finalize on the last FFN tile: bias + residual + LayerNorm ---------
    @pl.when(i_idx == pl.num_programs(2) - 1)
    def _finalize():
        ffn = acc_sc[...] + bo_ref[...]
        out = _layer_norm(ffn + attn_sc[...], g2_ref[...], b2_ref[...], eps)
        out_ref[0] = out.astype(out_ref.dtype)


# ----------------------------------------------------------------------------
# Wrapper: one BertLayer.
# ----------------------------------------------------------------------------
def bert_layer_pallas(x, params, *, num_heads, layer_norm_eps,
                      tile_s=None, tile_i=None):
    B, S, H = x.shape
    head_dim = H // num_heads
    I = params["wi"].shape[1]

    cap = _vmem_capacity_bytes()
    budget = int(cap * 0.55)                   # leave headroom for compiler scratch
    tS, tI = _select_tiles(B, S, H, I, budget)
    if tile_s is not None:
        tS = tile_s
    if tile_i is not None:
        tI = tile_i
    assert S % tS == 0 and I % tI == 0
    n_s, n_i = S // tS, I // tI

    # With B >= 2 the batch axis carries the megacore parallelism and K/V can
    # be cached across s-tiles (s axis becomes sequential per core). With
    # B == 1 keep the s axis parallel (>= 2 tiles) so both v7x cores get work.
    cache_kv = B > 1

    bf16 = jnp.bfloat16
    x_bf = x.astype(bf16)                      # K/V source only consumed as bf16
    wq = params["wq"].astype(bf16)
    wk = params["wk"].astype(bf16)
    wv = params["wv"].astype(bf16)
    wao = params["wao"].astype(bf16)
    wi = params["wi"].astype(bf16)
    wo = params["wo"].astype(bf16)

    kernel = functools.partial(
        bert_layer_kernel,
        num_heads=num_heads,
        head_dim=head_dim,
        layer_norm_eps=layer_norm_eps,
        cache_kv=cache_kv,
    )

    in_specs = [
        pl.BlockSpec((1, tS, H), lambda b, s, i: (b, s, 0)),   # x (query rows, f32)
        pl.BlockSpec((1, S, H), lambda b, s, i: (b, 0, 0)),    # x (full seq, bf16)
        _const_spec((H, H)), _const_spec((1, H)),              # wq, bq
        _const_spec((H, H)), _const_spec((1, H)),              # wk, bk
        _const_spec((H, H)), _const_spec((1, H)),              # wv, bv
        _const_spec((H, H)), _const_spec((1, H)),              # wao, bao
        _const_spec((1, H)), _const_spec((1, H)),              # ln1 gamma/beta
        pl.BlockSpec((H, tI), lambda b, s, i: (0, i)),         # wi tile
        pl.BlockSpec((1, tI), lambda b, s, i: (0, i)),         # bi tile
        pl.BlockSpec((tI, H), lambda b, s, i: (i, 0)),         # wo tile
        _const_spec((1, H)),                                   # bo
        _const_spec((1, H)), _const_spec((1, H)),              # ln2 gamma/beta
    ]
    out_spec = pl.BlockSpec((1, tS, H), lambda b, s, i: (b, s, 0))

    est = _vmem_bytes(S, H, tS, tI)
    vmem_limit = int(min(int(cap * 0.85), max(32 * 2 ** 20, 2 * est)))

    # Advisory cost estimate so XLA can overlap adjacent layer calls.
    flops = int(B * (8 * S * H * H + 4 * S * S * H + 4 * S * H * I))
    transcendentals = int(B * (num_heads * S * S + S * I))
    bytes_accessed = int(2 * (4 * H * H + 2 * H * I)       # bf16 weights
                         + 4 * B * S * H * 2                # x f32 + out f32
                         + 2 * B * S * H                    # x bf16 (K/V copy)
                         + 4 * (8 * H + 2 * I))             # biases / LN params

    fn = pl.pallas_call(
        kernel,
        out_shape=jax.ShapeDtypeStruct((B, S, H), jnp.float32),
        grid=(B, n_s, n_i),
        in_specs=in_specs,
        out_specs=out_spec,
        scratch_shapes=[
            pltpu.VMEM((S, H), bf16),            # K cache (per batch element)
            pltpu.VMEM((S, H), bf16),            # V cache
            pltpu.VMEM((tS, H), bf16),           # scaled Q (bf16)
            pltpu.VMEM((tS, H), jnp.float32),    # attention output (post-LN1)
            pltpu.VMEM((tS, H), bf16),           # bf16 copy for FFN GEMM input
            pltpu.VMEM((tS, H), jnp.float32),    # FFN accumulator
        ],
        compiler_params=pltpu.CompilerParams(
            dimension_semantics=("parallel",
                                 "arbitrary" if cache_kv else "parallel",
                                 "arbitrary"),
            vmem_limit_bytes=vmem_limit,
        ),
        cost_estimate=pl.CostEstimate(flops=flops,
                                      transcendentals=transcendentals,
                                      bytes_accessed=bytes_accessed),
    )

    return fn(
        x, x_bf,
        wq, params["bq"], wk, params["bk"], wv, params["bv"],
        wao, params["bao"], params["g1"], params["b1"],
        wi, params["bi"], wo, params["bo"],
        params["g2"], params["b2"],
    )


# ----------------------------------------------------------------------------
# Parameter init / encoder loop / pure-JAX reference.
# ----------------------------------------------------------------------------
def init_bert_layer_params(key, hidden_size, intermediate_size):
    H, I = hidden_size, intermediate_size
    keys = jax.random.split(key, 8)
    scale = 0.02

    def lin(k, fan_in, fan_out):
        return scale * jax.random.normal(k, (fan_in, fan_out), jnp.float32)

    return {
        "wq": lin(keys[0], H, H), "bq": jnp.zeros((1, H), jnp.float32),
        "wk": lin(keys[1], H, H), "bk": jnp.zeros((1, H), jnp.float32),
        "wv": lin(keys[2], H, H), "bv": jnp.zeros((1, H), jnp.float32),
        "wao": lin(keys[3], H, H), "bao": jnp.zeros((1, H), jnp.float32),
        "g1": jnp.ones((1, H), jnp.float32), "b1": jnp.zeros((1, H), jnp.float32),
        "wi": lin(keys[4], H, I), "bi": jnp.zeros((1, I), jnp.float32),
        "wo": lin(keys[5], I, H), "bo": jnp.zeros((1, H), jnp.float32),
        "g2": jnp.ones((1, H), jnp.float32), "b2": jnp.zeros((1, H), jnp.float32),
    }


def bert_encoder_forward(hidden_states, layer_params, *, num_heads,
                         layer_norm_eps):
    # Mirrors BertEncoder.forward with attention_mask=None, head_mask=None,
    # output_attentions=False, output_hidden_states=False (eval mode).
    for params in layer_params:
        hidden_states = bert_layer_pallas(
            hidden_states, params,
            num_heads=num_heads, layer_norm_eps=layer_norm_eps)
    return hidden_states, None, None


def bert_layer_reference(x, params, *, num_heads, layer_norm_eps):
    # Pure-JAX f32 reference matching the torch math exactly (eval mode).
    B, S, H = x.shape
    d = H // num_heads

    def ln(v, g, b):
        mu = v.mean(-1, keepdims=True)
        var = ((v - mu) ** 2).mean(-1, keepdims=True)
        return (v - mu) * jax.lax.rsqrt(var + layer_norm_eps) * g + b

    q = x @ params["wq"] + params["bq"]
    k = x @ params["wk"] + params["bk"]
    v = x @ params["wv"] + params["bv"]

    def split(t):
        return t.reshape(B, S, num_heads, d).transpose(0, 2, 1, 3)

    qh, kh, vh = split(q), split(k), split(v)
    scores = jnp.einsum('bhqd,bhkd->bhqk', qh, kh) / jnp.sqrt(jnp.float32(d))
    probs = jax.nn.softmax(scores, axis=-1)
    ctx = jnp.einsum('bhqk,bhkd->bhqd', probs, vh)
    ctx = ctx.transpose(0, 2, 1, 3).reshape(B, S, H)
    attn = ctx @ params["wao"] + params["bao"]
    attn = ln(attn + x, params["g1"], params["b1"])
    inter = attn @ params["wi"] + params["bi"]
    inter = 0.5 * inter * (1.0 + jax.lax.erf(inter / jnp.sqrt(jnp.float32(2.0))))
    ffn = inter @ params["wo"] + params["bo"]
    return ln(ffn + attn, params["g2"], params["b2"])


if __name__ == "__main__":
    layer_norm_eps = 1e-12

    # --- Test 1: small config (hidden=32, heads=4, inter=64, layers=2, S=8, B=2)
    hidden_size, num_attention_heads, intermediate_size = 32, 4, 64
    num_hidden_layers, batch, seq_len = 2, 2, 8

    key = jax.random.PRNGKey(0)
    key_x, key_x2, key_p2, *layer_keys = jax.random.split(
        key, num_hidden_layers + 3)

    hidden_states = jax.random.normal(
        key_x, (batch, seq_len, hidden_size), jnp.float32)
    layer_params = [
        init_bert_layer_params(k, hidden_size, intermediate_size)
        for k in layer_keys
    ]

    encoder = jax.jit(functools.partial(
        bert_encoder_forward,
        num_heads=num_attention_heads,
        layer_norm_eps=layer_norm_eps))

    out, _, _ = encoder(hidden_states, layer_params)
    jax.block_until_ready(out)

    assert out.shape == (batch, seq_len, hidden_size)
    assert bool(jnp.all(jnp.isfinite(out)))

    ref = hidden_states
    for p in layer_params:
        ref = bert_layer_reference(
            ref, p, num_heads=num_attention_heads,
            layer_norm_eps=layer_norm_eps)
    max_err = float(jnp.max(jnp.abs(out - ref)))
    assert max_err < 7.5e-2, f"max abs err vs reference: {max_err}"

    # --- Test 2: exercise the tiled paths (n_s > 1, n_i > 1, B == 1 / no KV cache)
    H2, nh2, I2, B2, S2 = 32, 4, 256, 1, 16
    x2 = jax.random.normal(key_x2, (B2, S2, H2), jnp.float32)
    p2 = init_bert_layer_params(key_p2, H2, I2)
    out2 = bert_layer_pallas(x2, p2, num_heads=nh2,
                             layer_norm_eps=layer_norm_eps,
                             tile_s=8, tile_i=128)
    jax.block_until_ready(out2)
    ref2 = bert_layer_reference(x2, p2, num_heads=nh2,
                                layer_norm_eps=layer_norm_eps)
    max_err2 = float(jnp.max(jnp.abs(out2 - ref2)))
    assert bool(jnp.all(jnp.isfinite(out2)))
    assert max_err2 < 7.5e-2, f"tiled-path max abs err vs reference: {max_err2}"

    print("KERNEL_OK")
</pallas_src>

<mosaic_0001>
module attributes {stable_mosaic.version = 11 : i64} {
  func.func @bert_layer_kernel(%arg0: i32, %arg1: i32, %arg2: i32, %arg3: memref<1x8x32xf32, #tpu.memory_space<vmem>>, %arg4: memref<1x8x32xbf16, #tpu.memory_space<vmem>>, %arg5: memref<32x32xbf16, #tpu.memory_space<vmem>>, %arg6: memref<1x32xf32, #tpu.memory_space<vmem>>, %arg7: memref<32x32xbf16, #tpu.memory_space<vmem>>, %arg8: memref<1x32xf32, #tpu.memory_space<vmem>>, %arg9: memref<32x32xbf16, #tpu.memory_space<vmem>>, %arg10: memref<1x32xf32, #tpu.memory_space<vmem>>, %arg11: memref<32x32xbf16, #tpu.memory_space<vmem>>, %arg12: memref<1x32xf32, #tpu.memory_space<vmem>>, %arg13: memref<1x32xf32, #tpu.memory_space<vmem>>, %arg14: memref<1x32xf32, #tpu.memory_space<vmem>>, %arg15: memref<32x64xbf16, #tpu.memory_space<vmem>>, %arg16: memref<1x64xf32, #tpu.memory_space<vmem>>, %arg17: memref<64x32xbf16, #tpu.memory_space<vmem>>, %arg18: memref<1x32xf32, #tpu.memory_space<vmem>>, %arg19: memref<1x32xf32, #tpu.memory_space<vmem>>, %arg20: memref<1x32xf32, #tpu.memory_space<vmem>>, %arg21: memref<1x8x32xf32, #tpu.memory_space<vmem>>, %arg22: memref<8x32xbf16, #tpu.memory_space<vmem>>, %arg23: memref<8x32xbf16, #tpu.memory_space<vmem>>, %arg24: memref<8x32xbf16, #tpu.memory_space<vmem>>, %arg25: memref<8x32xf32, #tpu.memory_space<vmem>>, %arg26: memref<8x32xbf16, #tpu.memory_space<vmem>>, %arg27: memref<8x32xf32, #tpu.memory_space<vmem>>) attributes {dimension_semantics = [#tpu.dimension_semantics<parallel>, #tpu.dimension_semantics<arbitrary>, #tpu.dimension_semantics<arbitrary>], iteration_bounds = array<i64: 2, 1, 1>, scalar_prefetch = 0 : i64, scratch_operands = 6 : i64, tpu.core_type = #tpu.core_type<tc>, window_params = [{transform_indices = @transform_0, window_bounds = array<i64: 1, 8, 32>}, {transform_indices = @transform_1, window_bounds = array<i64: 1, 8, 32>}, {pipeline_mode = #tpu.pipeline_mode<synchronous>, transform_indices = @transform_2, window_bounds = array<i64: 32, 32>}, {pipeline_mode = #tpu.pipeline_mode<synchronous>, transform_indices = @transform_3, window_bounds = array<i64: 1, 32>}, {pipeline_mode = #tpu.pipeline_mode<synchronous>, transform_indices = @transform_4, window_bounds = array<i64: 32, 32>}, {pipeline_mode = #tpu.pipeline_mode<synchronous>, transform_indices = @transform_5, window_bounds = array<i64: 1, 32>}, {pipeline_mode = #tpu.pipeline_mode<synchronous>, transform_indices = @transform_6, window_bounds = array<i64: 32, 32>}, {pipeline_mode = #tpu.pipeline_mode<synchronous>, transform_indices = @transform_7, window_bounds = array<i64: 1, 32>}, {pipeline_mode = #tpu.pipeline_mode<synchronous>, transform_indices = @transform_8, window_bounds = array<i64: 32, 32>}, {pipeline_mode = #tpu.pipeline_mode<synchronous>, transform_indices = @transform_9, window_bounds = array<i64: 1, 32>}, {pipeline_mode = #tpu.pipeline_mode<synchronous>, transform_indices = @transform_10, window_bounds = array<i64: 1, 32>}, {pipeline_mode = #tpu.pipeline_mode<synchronous>, transform_indices = @transform_11, window_bounds = array<i64: 1, 32>}, {transform_indices = @transform_12, window_bounds = array<i64: 32, 64>}, {transform_indices = @transform_13, window_bounds = array<i64: 1, 64>}, {transform_indices = @transform_14, window_bounds = array<i64: 64, 32>}, {pipeline_mode = #tpu.pipeline_mode<synchronous>, transform_indices = @transform_15, window_bounds = array<i64: 1, 32>}, {pipeline_mode = #tpu.pipeline_mode<synchronous>, transform_indices = @transform_16, window_bounds = array<i64: 1, 32>}, {pipeline_mode = #tpu.pipeline_mode<synchronous>, transform_indices = @transform_17, window_bounds = array<i64: 1, 32>}, {transform_indices = @transform_18, window_bounds = array<i64: 1, 8, 32>}]} {
    %c0_i32 = arith.constant 0 : i32
    %0 = arith.cmpi eq, %arg2, %c0_i32 : i32
    %c0_i32_0 = arith.constant 0 : i32
    %1 = arith.cmpi eq, %arg1, %c0_i32_0 : i32
    %2 = arith.andi %0, %1 : i1
    %3 = arith.extui %2 : i1 to i32
    %c0_i32_1 = arith.constant 0 : i32
    %4 = arith.cmpi ne, %3, %c0_i32_1 : i32
    scf.if %4 {
      %c0_23 = arith.constant 0 : index
      %c0_24 = arith.constant 0 : index
      %c0_25 = arith.constant 0 : index
      %31 = vector.load %arg4[%c0_23, %c0_24, %c0_25] : memref<1x8x32xbf16, #tpu.memory_space<vmem>>, vector<1x8x32xbf16>
      %32 = vector.shape_cast %31 : vector<1x8x32xbf16> to vector<8x32xbf16>
      %c0_26 = arith.constant 0 : index
      %c0_27 = arith.constant 0 : index
      %33 = vector.load %arg7[%c0_26, %c0_27] : memref<32x32xbf16, #tpu.memory_space<vmem>>, vector<32x32xbf16>
      %cst_28 = arith.constant dense<0.000000e+00> : vector<8x32xf32>
      %34 = tpu.matmul %32, %33, %cst_28 {dimension_numbers = #tpu.dot_dimension_numbers<[1], [0], [0], [1], [0, 0, 1, 1], [], []>} : vector<8x32xbf16>, vector<32x32xbf16>, vector<8x32xf32> -> vector<8x32xf32>
      %c0_29 = arith.constant 0 : index
      %c0_30 = arith.constant 0 : index
      %35 = vector.load %arg8[%c0_29, %c0_30] : memref<1x32xf32, #tpu.memory_space<vmem>>, vector<1x32xf32>
      %36 = vector.broadcast %35 : vector<1x32xf32> to vector<8x32xf32>
      %37 = arith.addf %34, %36 : vector<8x32xf32>
      %c0_31 = arith.constant 0 : index
      %c0_32 = arith.constant 0 : index
      %38 = vector.load %arg9[%c0_31, %c0_32] : memref<32x32xbf16, #tpu.memory_space<vmem>>, vector<32x32xbf16>
      %cst_33 = arith.constant dense<0.000000e+00> : vector<8x32xf32>
      %39 = tpu.matmul %32, %38, %cst_33 {dimension_numbers = #tpu.dot_dimension_numbers<[1], [0], [0], [1], [0, 0, 1, 1], [], []>} : vector<8x32xbf16>, vector<32x32xbf16>, vector<8x32xf32> -> vector<8x32xf32>
      %c0_34 = arith.constant 0 : index
      %c0_35 = arith.constant 0 : index
      %40 = vector.load %arg10[%c0_34, %c0_35] : memref<1x32xf32, #tpu.memory_space<vmem>>, vector<1x32xf32>
      %41 = vector.broadcast %40 : vector<1x32xf32> to vector<8x32xf32>
      %42 = arith.addf %39, %41 : vector<8x32xf32>
      %43 = arith.truncf %37 : vector<8x32xf32> to vector<8x32xbf16>
      %c0_36 = arith.constant 0 : index
      %c0_37 = arith.constant 0 : index
      %44 = vector.load %arg22[%c0_36, %c0_37] : memref<8x32xbf16, #tpu.memory_space<vmem>>, vector<8x32xbf16>
      tpu.vector_store %arg22[%c0_36, %c0_37], %43 {strides = array<i32>} : memref<8x32xbf16, #tpu.memory_space<vmem>>, vector<8x32xbf16>,
      %45 = arith.truncf %42 : vector<8x32xf32> to vector<8x32xbf16>
      %c0_38 = arith.constant 0 : index
      %c0_39 = arith.constant 0 : index
      %46 = vector.load %arg23[%c0_38, %c0_39] : memref<8x32xbf16, #tpu.memory_space<vmem>>, vector<8x32xbf16>
      tpu.vector_store %arg23[%c0_38, %c0_39], %45 {strides = array<i32>} : memref<8x32xbf16, #tpu.memory_space<vmem>>, vector<8x32xbf16>,
    } else {
    }
    %c0_i32_2 = arith.constant 0 : i32
    %5 = arith.cmpi eq, %arg2, %c0_i32_2 : i32
    %6 = arith.extui %5 : i1 to i32
    %cst = arith.constant 9.99999996E-13 : f32
    %c0_i32_3 = arith.constant 0 : i32
    %7 = arith.cmpi ne, %6, %c0_i32_3 : i32
    scf.if %7 {
      %c0_23 = arith.constant 0 : index
      %c0_24 = arith.constant 0 : index
      %c0_25 = arith.constant 0 : index
      %31 = vector.load %arg3[%c0_23, %c0_24, %c0_25] : memref<1x8x32xf32, #tpu.memory_space<vmem>>, vector<1x8x32xf32>
      %32 = vector.shape_cast %31 : vector<1x8x32xf32> to vector<8x32xf32>
      %33 = arith.truncf %32 : vector<8x32xf32> to vector<8x32xbf16>
      %c0_26 = arith.constant 0 : index
      %c0_27 = arith.constant 0 : index
      %34 = vector.load %arg5[%c0_26, %c0_27] : memref<32x32xbf16, #tpu.memory_space<vmem>>, vector<32x32xbf16>
      %cst_28 = arith.constant dense<0.000000e+00> : vector<8x32xf32>
      %35 = tpu.matmul %33, %34, %cst_28 {dimension_numbers = #tpu.dot_dimension_numbers<[1], [0], [0], [1], [0, 0, 1, 1], [], []>} : vector<8x32xbf16>, vector<32x32xbf16>, vector<8x32xf32> -> vector<8x32xf32>
      %c0_29 = arith.constant 0 : index
      %c0_30 = arith.constant 0 : index
      %36 = vector.load %arg6[%c0_29, %c0_30] : memref<1x32xf32, #tpu.memory_space<vmem>>, vector<1x32xf32>
      %37 = vector.broadcast %36 : vector<1x32xf32> to vector<8x32xf32>
      %38 = arith.addf %35, %37 : vector<8x32xf32>
      %cst_31 = arith.constant 0.353553385 : f32
      %39 = vector.broadcast %cst_31 : f32 to vector<8x32xf32>
      %40 = arith.mulf %38, %39 : vector<8x32xf32>
      %41 = arith.truncf %40 : vector<8x32xf32> to vector<8x32xbf16>
      %c0_32 = arith.constant 0 : index
      %c0_33 = arith.constant 0 : index
      %42 = vector.load %arg24[%c0_32, %c0_33] : memref<8x32xbf16, #tpu.memory_space<vmem>>, vector<8x32xbf16>
      tpu.vector_store %arg24[%c0_32, %c0_33], %41 {strides = array<i32>} : memref<8x32xbf16, #tpu.memory_space<vmem>>, vector<8x32xbf16>,
      %cst_34 = arith.constant 0.000000e+00 : f32
      %43 = vector.broadcast %cst_34 : f32 to vector<8x32xf32>
      %c0_35 = arith.constant 0 : index
      %c0_36 = arith.constant 0 : index
      %44 = vector.load %arg24[%c0_35, %c0_36] : memref<8x32xbf16, #tpu.memory_space<vmem>>, vector<8x8xbf16>
      %c0_37 = arith.constant 0 : index
      %c0_38 = arith.constant 0 : index
      %45 = vector.load %arg22[%c0_37, %c0_38] : memref<8x32xbf16, #tpu.memory_space<vmem>>, vector<8x8xbf16>
      %c0_39 = arith.constant 0 : index
      %c0_40 = arith.constant 0 : index
      %46 = vector.load %arg23[%c0_39, %c0_40] : memref<8x32xbf16, #tpu.memory_space<vmem>>, vector<8x8xbf16>
      "tpu.trace_start"() <{level = 10 : i32, message = "qd,kd->qk"}> : () -> ()
      %cst_41 = arith.constant dense<0.000000e+00> : vector<8x8xf32>
      %47 = tpu.matmul %44, %45, %cst_41 {dimension_numbers = #tpu.dot_dimension_numbers<[1], [1], [0], [0], [0, 0, 1, 0], [], []>} : vector<8x8xbf16>, vector<8x8xbf16>, vector<8x8xf32> -> vector<8x8xf32>
      "tpu.trace_stop"() : () -> ()
      %cst_42 = arith.constant dense<0xFF800000> : vector<8xf32>
      %48 = vector.multi_reduction <maximumf>, %47, %cst_42 [1] : vector<8x8xf32> to vector<8xf32>
      %49 = vector.shape_cast %48 : vector<8xf32> to vector<8x1xf32>
      %50 = vector.broadcast %49 : vector<8x1xf32> to vector<8x8xf32>
      %51 = arith.subf %47, %50 : vector<8x8xf32>
      %52 = math.exp %51 : vector<8x8xf32>
      %cst_43 = arith.constant dense<0.000000e+00> : vector<8xf32>
      %53 = vector.multi_reduction <add>, %52, %cst_43 [1] : vector<8x8xf32> to vector<8xf32>
      %54 = vector.shape_cast %53 : vector<8xf32> to vector<8x1xf32>
      %55 = tpu.reciprocal %54 {approx = true} : vector<8x1xf32> -> vector<8x1xf32>
      %56 = vector.broadcast %55 : vector<8x1xf32> to vector<8x8xf32>
      %57 = arith.mulf %52, %56 : vector<8x8xf32>
      %58 = arith.truncf %57 : vector<8x8xf32> to vector<8x8xbf16>
      %cst_44 = arith.constant dense<0.000000e+00> : vector<8x8xf32>
      %59 = tpu.matmul %58, %46, %cst_44 {dimension_numbers = #tpu.dot_dimension_numbers<[1], [0], [0], [1], [0, 0, 1, 1], [], []>} : vector<8x8xbf16>, vector<8x8xbf16>, vector<8x8xf32> -> vector<8x8xf32>
      %60 = arith.truncf %59 : vector<8x8xf32> to vector<8x8xbf16>
      %c0_45 = arith.constant 0 : index
      %c0_46 = arith.constant 0 : index
      %61 = vector.load %arg11[%c0_45, %c0_46] : memref<32x32xbf16, #tpu.memory_space<vmem>>, vector<8x32xbf16>
      %cst_47 = arith.constant dense<0.000000e+00> : vector<8x32xf32>
      %62 = tpu.matmul %60, %61, %cst_47 {dimension_numbers = #tpu.dot_dimension_numbers<[1], [0], [0], [1], [0, 0, 1, 1], [], []>} : vector<8x8xbf16>, vector<8x32xbf16>, vector<8x32xf32> -> vector<8x32xf32>
      %63 = arith.addf %43, %62 : vector<8x32xf32>
      %c0_48 = arith.constant 0 : index
      %c8 = arith.constant 8 : index
      %64 = vector.load %arg24[%c0_48, %c8] : memref<8x32xbf16, #tpu.memory_space<vmem>>, vector<8x8xbf16>
      %c0_49 = arith.constant 0 : index
      %c8_50 = arith.constant 8 : index
      %65 = vector.load %arg22[%c0_49, %c8_50] : memref<8x32xbf16, #tpu.memory_space<vmem>>, vector<8x8xbf16>
      %c0_51 = arith.constant 0 : index
      %c8_52 = arith.constant 8 : index
      %66 = vector.load %arg23[%c0_51, %c8_52] : memref<8x32xbf16, #tpu.memory_space<vmem>>, vector<8x8xbf16>
      "tpu.trace_start"() <{level = 10 : i32, message = "qd,kd->qk"}> : () -> ()
      %cst_53 = arith.constant dense<0.000000e+00> : vector<8x8xf32>
      %67 = tpu.matmul %64, %65, %cst_53 {dimension_numbers = #tpu.dot_dimension_numbers<[1], [1], [0], [0], [0, 0, 1, 0], [], []>} : vector<8x8xbf16>, vector<8x8xbf16>, vector<8x8xf32> -> vector<8x8xf32>
      "tpu.trace_stop"() : () -> ()
      %cst_54 = arith.constant dense<0xFF800000> : vector<8xf32>
      %68 = vector.multi_reduction <maximumf>, %67, %cst_54 [1] : vector<8x8xf32> to vector<8xf32>
      %69 = vector.shape_cast %68 : vector<8xf32> to vector<8x1xf32>
      %70 = vector.broadcast %69 : vector<8x1xf32> to vector<8x8xf32>
      %71 = arith.subf %67, %70 : vector<8x8xf32>
      %72 = math.exp %71 : vector<8x8xf32>
      %cst_55 = arith.constant dense<0.000000e+00> : vector<8xf32>
      %73 = vector.multi_reduction <add>, %72, %cst_55 [1] : vector<8x8xf32> to vector<8xf32>
      %74 = vector.shape_cast %73 : vector<8xf32> to vector<8x1xf32>
      %75 = tpu.reciprocal %74 {approx = true} : vector<8x1xf32> -> vector<8x1xf32>
      %76 = vector.broadcast %75 : vector<8x1xf32> to vector<8x8xf32>
      %77 = arith.mulf %72, %76 : vector<8x8xf32>
      %78 = arith.truncf %77 : vector<8x8xf32> to vector<8x8xbf16>
      %cst_56 = arith.constant dense<0.000000e+00> : vector<8x8xf32>
      %79 = tpu.matmul %78, %66, %cst_56 {dimension_numbers = #tpu.dot_dimension_numbers<[1], [0], [0], [1], [0, 0, 1, 1], [], []>} : vector<8x8xbf16>, vector<8x8xbf16>, vector<8x8xf32> -> vector<8x8xf32>
      %80 = arith.truncf %79 : vector<8x8xf32> to vector<8x8xbf16>
      %c8_57 = arith.constant 8 : index
      %c0_58 = arith.constant 0 : index
      %81 = vector.load %arg11[%c8_57, %c0_58] : memref<32x32xbf16, #tpu.memory_space<vmem>>, vector<8x32xbf16>
      %cst_59 = arith.constant dense<0.000000e+00> : vector<8x32xf32>
      %82 = tpu.matmul %80, %81, %cst_59 {dimension_numbers = #tpu.dot_dimension_numbers<[1], [0], [0], [1], [0, 0, 1, 1], [], []>} : vector<8x8xbf16>, vector<8x32xbf16>, vector<8x32xf32> -> vector<8x32xf32>
      %83 = arith.addf %63, %82 : vector<8x32xf32>
      %c0_60 = arith.constant 0 : index
      %c16 = arith.constant 16 : index
      %84 = vector.load %arg24[%c0_60, %c16] : memref<8x32xbf16, #tpu.memory_space<vmem>>, vector<8x8xbf16>
      %c0_61 = arith.constant 0 : index
      %c16_62 = arith.constant 16 : index
      %85 = vector.load %arg22[%c0_61, %c16_62] : memref<8x32xbf16, #tpu.memory_space<vmem>>, vector<8x8xbf16>
      %c0_63 = arith.constant 0 : index
      %c16_64 = arith.constant 16 : index
      %86 = vector.load %arg23[%c0_63, %c16_64] : memref<8x32xbf16, #tpu.memory_space<vmem>>, vector<8x8xbf16>
      "tpu.trace_start"() <{level = 10 : i32, message = "qd,kd->qk"}> : () -> ()
      %cst_65 = arith.constant dense<0.000000e+00> : vector<8x8xf32>
      %87 = tpu.matmul %84, %85, %cst_65 {dimension_numbers = #tpu.dot_dimension_numbers<[1], [1], [0], [0], [0, 0, 1, 0], [], []>} : vector<8x8xbf16>, vector<8x8xbf16>, vector<8x8xf32> -> vector<8x8xf32>
      "tpu.trace_stop"() : () -> ()
      %cst_66 = arith.constant dense<0xFF800000> : vector<8xf32>
      %88 = vector.multi_reduction <maximumf>, %87, %cst_66 [1] : vector<8x8xf32> to vector<8xf32>
      %89 = vector.shape_cast %88 : vector<8xf32> to vector<8x1xf32>
      %90 = vector.broadcast %89 : vector<8x1xf32> to vector<8x8xf32>
      %91 = arith.subf %87, %90 : vector<8x8xf32>
      %92 = math.exp %91 : vector<8x8xf32>
      %cst_67 = arith.constant dense<0.000000e+00> : vector<8xf32>
      %93 = vector.multi_reduction <add>, %92, %cst_67 [1] : vector<8x8xf32> to vector<8xf32>
      %94 = vector.shape_cast %93 : vector<8xf32> to vector<8x1xf32>
      %95 = tpu.reciprocal %94 {approx = true} : vector<8x1xf32> -> vector<8x1xf32>
      %96 = vector.broadcast %95 : vector<8x1xf32> to vector<8x8xf32>
      %97 = arith.mulf %92, %96 : vector<8x8xf32>
      %98 = arith.truncf %97 : vector<8x8xf32> to vector<8x8xbf16>
      %cst_68 = arith.constant dense<0.000000e+00> : vector<8x8xf32>
      %99 = tpu.matmul %98, %86, %cst_68 {dimension_numbers = #tpu.dot_dimension_numbers<[1], [0], [0], [1], [0, 0, 1, 1], [], []>} : vector<8x8xbf16>, vector<8x8xbf16>, vector<8x8xf32> -> vector<8x8xf32>
      %100 = arith.truncf %99 : vector<8x8xf32> to vector<8x8xbf16>
      %c16_69 = arith.constant 16 : index
      %c0_70 = arith.constant 0 : index
      %101 = vector.load %arg11[%c16_69, %c0_70] : memref<32x32xbf16, #tpu.memory_space<vmem>>, vector<8x32xbf16>
      %cst_71 = arith.constant dense<0.000000e+00> : vector<8x32xf32>
      %102 = tpu.matmul %100, %101, %cst_71 {dimension_numbers = #tpu.dot_dimension_numbers<[1], [0], [0], [1], [0, 0, 1, 1], [], []>} : vector<8x8xbf16>, vector<8x32xbf16>, vector<8x32xf32> -> vector<8x32xf32>
      %103 = arith.addf %83, %102 : vector<8x32xf32>
      %c0_72 = arith.constant 0 : index
      %c24 = arith.constant 24 : index
      %104 = vector.load %arg24[%c0_72, %c24] : memref<8x32xbf16, #tpu.memory_space<vmem>>, vector<8x8xbf16>
      %c0_73 = arith.constant 0 : index
      %c24_74 = arith.constant 24 : index
      %105 = vector.load %arg22[%c0_73, %c24_74] : memref<8x32xbf16, #tpu.memory_space<vmem>>, vector<8x8xbf16>
      %c0_75 = arith.constant 0 : index
      %c24_76 = arith.constant 24 : index
      %106 = vector.load %arg23[%c0_75, %c24_76] : memref<8x32xbf16, #tpu.memory_space<vmem>>, vector<8x8xbf16>
      "tpu.trace_start"() <{level = 10 : i32, message = "qd,kd->qk"}> : () -> ()
      %cst_77 = arith.constant dense<0.000000e+00> : vector<8x8xf32>
      %107 = tpu.matmul %104, %105, %cst_77 {dimension_numbers = #tpu.dot_dimension_numbers<[1], [1], [0], [0], [0, 0, 1, 0], [], []>} : vector<8x8xbf16>, vector<8x8xbf16>, vector<8x8xf32> -> vector<8x8xf32>
      "tpu.trace_stop"() : () -> ()
      %cst_78 = arith.constant dense<0xFF800000> : vector<8xf32>
      %108 = vector.multi_reduction <maximumf>, %107, %cst_78 [1] : vector<8x8xf32> to vector<8xf32>
      %109 = vector.shape_cast %108 : vector<8xf32> to vector<8x1xf32>
      %110 = vector.broadcast %109 : vector<8x1xf32> to vector<8x8xf32>
      %111 = arith.subf %107, %110 : vector<8x8xf32>
      %112 = math.exp %111 : vector<8x8xf32>
      %cst_79 = arith.constant dense<0.000000e+00> : vector<8xf32>
      %113 = vector.multi_reduction <add>, %112, %cst_79 [1] : vector<8x8xf32> to vector<8xf32>
      %114 = vector.shape_cast %113 : vector<8xf32> to vector<8x1xf32>
      %115 = tpu.reciprocal %114 {approx = true} : vector<8x1xf32> -> vector<8x1xf32>
      %116 = vector.broadcast %115 : vector<8x1xf32> to vector<8x8xf32>
      %117 = arith.mulf %112, %116 : vector<8x8xf32>
      %118 = arith.truncf %117 : vector<8x8xf32> to vector<8x8xbf16>
      %cst_80 = arith.constant dense<0.000000e+00> : vector<8x8xf32>
      %119 = tpu.matmul %118, %106, %cst_80 {dimension_numbers = #tpu.dot_dimension_numbers<[1], [0], [0], [1], [0, 0, 1, 1], [], []>} : vector<8x8xbf16>, vector<8x8xbf16>, vector<8x8xf32> -> vector<8x8xf32>
      %120 = arith.truncf %119 : vector<8x8xf32> to vector<8x8xbf16>
      %c24_81 = arith.constant 24 : index
      %c0_82 = arith.constant 0 : index
      %121 = vector.load %arg11[%c24_81, %c0_82] : memref<32x32xbf16, #tpu.memory_space<vmem>>, vector<8x32xbf16>
      %cst_83 = arith.constant dense<0.000000e+00> : vector<8x32xf32>
      %122 = tpu.matmul %120, %121, %cst_83 {dimension_numbers = #tpu.dot_dimension_numbers<[1], [0], [0], [1], [0, 0, 1, 1], [], []>} : vector<8x8xbf16>, vector<8x32xbf16>, vector<8x32xf32> -> vector<8x32xf32>
      %123 = arith.addf %103, %122 : vector<8x32xf32>
      %c0_84 = arith.constant 0 : index
      %c0_85 = arith.constant 0 : index
      %124 = vector.load %arg12[%c0_84, %c0_85] : memref<1x32xf32, #tpu.memory_space<vmem>>, vector<1x32xf32>
      %125 = vector.broadcast %124 : vector<1x32xf32> to vector<8x32xf32>
      %126 = arith.addf %123, %125 : vector<8x32xf32>
      %127 = arith.addf %126, %32 : vector<8x32xf32>
      %c0_86 = arith.constant 0 : index
      %c0_87 = arith.constant 0 : index
      %128 = vector.load %arg13[%c0_86, %c0_87] : memref<1x32xf32, #tpu.memory_space<vmem>>, vector<1x32xf32>
      %c0_88 = arith.constant 0 : index
      %c0_89 = arith.constant 0 : index
      %129 = vector.load %arg14[%c0_88, %c0_89] : memref<1x32xf32, #tpu.memory_space<vmem>>, vector<1x32xf32>
      %cst_90 = arith.constant dense<0.000000e+00> : vector<8xf32>
      %130 = vector.multi_reduction <add>, %127, %cst_90 [1] : vector<8x32xf32> to vector<8xf32>
      %131 = vector.shape_cast %130 : vector<8xf32> to vector<8x1xf32>
      %cst_91 = arith.constant 3.200000e+01 : f32
      %132 = vector.broadcast %cst_91 : f32 to vector<8x1xf32>
      %133 = arith.divf %131, %132 : vector<8x1xf32>
      %134 = vector.broadcast %133 : vector<8x1xf32> to vector<8x32xf32>
      %135 = arith.subf %127, %134 : vector<8x32xf32>
      %136 = arith.mulf %135, %135 : vector<8x32xf32>
      %cst_92 = arith.constant dense<0.000000e+00> : vector<8xf32>
      %137 = vector.multi_reduction <add>, %136, %cst_92 [1] : vector<8x32xf32> to vector<8xf32>
      %138 = vector.shape_cast %137 : vector<8xf32> to vector<8x1xf32>
      %cst_93 = arith.constant 3.200000e+01 : f32
      %139 = vector.broadcast %cst_93 : f32 to vector<8x1xf32>
      %140 = arith.divf %138, %139 : vector<8x1xf32>
      %141 = vector.broadcast %cst : f32 to vector<8x1xf32>
      %142 = arith.addf %140, %141 : vector<8x1xf32>
      %143 = math.rsqrt %142 : vector<8x1xf32>
      %144 = vector.broadcast %133 : vector<8x1xf32> to vector<8x32xf32>
      %145 = arith.subf %127, %144 : vector<8x32xf32>
      %146 = vector.broadcast %143 : vector<8x1xf32> to vector<8x32xf32>
      %147 = arith.mulf %145, %146 : vector<8x32xf32>
      %148 = vector.broadcast %128 : vector<1x32xf32> to vector<8x32xf32>
      %149 = arith.mulf %147, %148 : vector<8x32xf32>
      %150 = vector.broadcast %129 : vector<1x32xf32> to vector<8x32xf32>
      %151 = arith.addf %149, %150 : vector<8x32xf32>
      %c0_94 = arith.constant 0 : index
      %c0_95 = arith.constant 0 : index
      %152 = vector.load %arg25[%c0_94, %c0_95] : memref<8x32xf32, #tpu.memory_space<vmem>>, vector<8x32xf32>
      tpu.vector_store %arg25[%c0_94, %c0_95], %151 {strides = array<i32>} : memref<8x32xf32, #tpu.memory_space<vmem>>, vector<8x32xf32>,
      %153 = arith.truncf %151 : vector<8x32xf32> to vector<8x32xbf16>
      %c0_96 = arith.constant 0 : index
      %c0_97 = arith.constant 0 : index
      %154 = vector.load %arg26[%c0_96, %c0_97] : memref<8x32xbf16, #tpu.memory_space<vmem>>, vector<8x32xbf16>
      tpu.vector_store %arg26[%c0_96, %c0_97], %153 {strides = array<i32>} : memref<8x32xbf16, #tpu.memory_space<vmem>>, vector<8x32xbf16>,
      %cst_98 = arith.constant 0.000000e+00 : f32
      %155 = vector.broadcast %cst_98 : f32 to vector<8x32xf32>
      %c0_99 = arith.constant 0 : index
      %c0_100 = arith.constant 0 : index
      %156 = vector.load %arg27[%c0_99, %c0_100] : memref<8x32xf32, #tpu.memory_space<vmem>>, vector<8x32xf32>
      tpu.vector_store %arg27[%c0_99, %c0_100], %155 {strides = array<i32>} : memref<8x32xf32, #tpu.memory_space<vmem>>, vector<8x32xf32>,
    } else {
    }
    %c0 = arith.constant 0 : index
    %c0_4 = arith.constant 0 : index
    %8 = vector.load %arg26[%c0, %c0_4] : memref<8x32xbf16, #tpu.memory_space<vmem>>, vector<8x32xbf16>
    %c0_5 = arith.constant 0 : index
    %c0_6 = arith.constant 0 : index
    %9 = vector.load %arg15[%c0_5, %c0_6] : memref<32x64xbf16, #tpu.memory_space<vmem>>, vector<32x64xbf16>
    %cst_7 = arith.constant dense<0.000000e+00> : vector<8x64xf32>
    %10 = tpu.matmul %8, %9, %cst_7 {dimension_numbers = #tpu.dot_dimension_numbers<[1], [0], [0], [1], [0, 0, 1, 1], [], []>} : vector<8x32xbf16>, vector<32x64xbf16>, vector<8x64xf32> -> vector<8x64xf32>
    %c0_8 = arith.constant 0 : index
    %c0_9 = arith.constant 0 : index
    %11 = vector.load %arg16[%c0_8, %c0_9] : memref<1x64xf32, #tpu.memory_space<vmem>>, vector<1x64xf32>
    %12 = vector.broadcast %11 : vector<1x64xf32> to vector<8x64xf32>
    %13 = arith.addf %10, %12 : vector<8x64xf32>
    %cst_10 = arith.constant 5.000000e-01 : f32
    %14 = vector.broadcast %cst_10 : f32 to vector<8x64xf32>
    %15 = arith.mulf %14, %13 : vector<8x64xf32>
    %cst_11 = arith.constant 0.707106769 : f32
    %16 = vector.broadcast %cst_11 : f32 to vector<8x64xf32>
    %17 = arith.mulf %13, %16 : vector<8x64xf32>
    %18 = math.erf %17 : vector<8x64xf32>
    %cst_12 = arith.constant 1.000000e+00 : f32
    %19 = vector.broadcast %cst_12 : f32 to vector<8x64xf32>
    %20 = arith.addf %19, %18 : vector<8x64xf32>
    %21 = arith.mulf %15, %20 : vector<8x64xf32>
    %c0_13 = arith.constant 0 : index
    %c0_14 = arith.constant 0 : index
    %22 = vector.load %arg27[%c0_13, %c0_14] : memref<8x32xf32, #tpu.memory_space<vmem>>, vector<8x32xf32>
    %23 = arith.truncf %21 : vector<8x64xf32> to vector<8x64xbf16>
    %c0_15 = arith.constant 0 : index
    %c0_16 = arith.constant 0 : index
    %24 = vector.load %arg17[%c0_15, %c0_16] : memref<64x32xbf16, #tpu.memory_space<vmem>>, vector<64x32xbf16>
    %cst_17 = arith.constant dense<0.000000e+00> : vector<8x32xf32>
    %25 = tpu.matmul %23, %24, %cst_17 {dimension_numbers = #tpu.dot_dimension_numbers<[1], [0], [0], [1], [0, 0, 1, 1], [], []>} : vector<8x64xbf16>, vector<64x32xbf16>, vector<8x32xf32> -> vector<8x32xf32>
    %26 = arith.addf %22, %25 : vector<8x32xf32>
    %c0_18 = arith.constant 0 : index
    %c0_19 = arith.constant 0 : index
    %27 = vector.load %arg27[%c0_18, %c0_19] : memref<8x32xf32, #tpu.memory_space<vmem>>, vector<8x32xf32>
    tpu.vector_store %arg27[%c0_18, %c0_19], %26 {strides = array<i32>} : memref<8x32xf32, #tpu.memory_space<vmem>>, vector<8x32xf32>,
    %c0_i32_20 = arith.constant 0 : i32
    %28 = arith.cmpi eq, %arg2, %c0_i32_20 : i32
    %29 = arith.extui %28 : i1 to i32
    %cst_21 = arith.constant 9.99999996E-13 : f32
    %c0_i32_22 = arith.constant 0 : i32
    %30 = arith.cmpi ne, %29, %c0_i32_22 : i32
    scf.if %30 {
      %c0_23 = arith.constant 0 : index
      %c0_24 = arith.constant 0 : index
      %31 = vector.load %arg27[%c0_23, %c0_24] : memref<8x32xf32, #tpu.memory_space<vmem>>, vector<8x32xf32>
      %c0_25 = arith.constant 0 : index
      %c0_26 = arith.constant 0 : index
      %32 = vector.load %arg18[%c0_25, %c0_26] : memref<1x32xf32, #tpu.memory_space<vmem>>, vector<1x32xf32>
      %33 = vector.broadcast %32 : vector<1x32xf32> to vector<8x32xf32>
      %34 = arith.addf %31, %33 : vector<8x32xf32>
      %c0_27 = arith.constant 0 : index
      %c0_28 = arith.constant 0 : index
      %35 = vector.load %arg25[%c0_27, %c0_28] : memref<8x32xf32, #tpu.memory_space<vmem>>, vector<8x32xf32>
      %36 = arith.addf %34, %35 : vector<8x32xf32>
      %c0_29 = arith.constant 0 : index
      %c0_30 = arith.constant 0 : index
      %37 = vector.load %arg19[%c0_29, %c0_30] : memref<1x32xf32, #tpu.memory_space<vmem>>, vector<1x32xf32>
      %c0_31 = arith.constant 0 : index
      %c0_32 = arith.constant 0 : index
      %38 = vector.load %arg20[%c0_31, %c0_32] : memref<1x32xf32, #tpu.memory_space<vmem>>, vector<1x32xf32>
      %cst_33 = arith.constant dense<0.000000e+00> : vector<8xf32>
      %39 = vector.multi_reduction <add>, %36, %cst_33 [1] : vector<8x32xf32> to vector<8xf32>
      %40 = vector.shape_cast %39 : vector<8xf32> to vector<8x1xf32>
      %cst_34 = arith.constant 3.200000e+01 : f32
      %41 = vector.broadcast %cst_34 : f32 to vector<8x1xf32>
      %42 = arith.divf %40, %41 : vector<8x1xf32>
      %43 = vector.broadcast %42 : vector<8x1xf32> to vector<8x32xf32>
      %44 = arith.subf %36, %43 : vector<8x32xf32>
      %45 = arith.mulf %44, %44 : vector<8x32xf32>
      %cst_35 = arith.constant dense<0.000000e+00> : vector<8xf32>
      %46 = vector.multi_reduction <add>, %45, %cst_35 [1] : vector<8x32xf32> to vector<8xf32>
      %47 = vector.shape_cast %46 : vector<8xf32> to vector<8x1xf32>
      %cst_36 = arith.constant 3.200000e+01 : f32
      %48 = vector.broadcast %cst_36 : f32 to vector<8x1xf32>
      %49 = arith.divf %47, %48 : vector<8x1xf32>
      %50 = vector.broadcast %cst_21 : f32 to vector<8x1xf32>
      %51 = arith.addf %49, %50 : vector<8x1xf32>
      %52 = math.rsqrt %51 : vector<8x1xf32>
      %53 = vector.broadcast %42 : vector<8x1xf32> to vector<8x32xf32>
      %54 = arith.subf %36, %53 : vector<8x32xf32>
      %55 = vector.broadcast %52 : vector<8x1xf32> to vector<8x32xf32>
      %56 = arith.mulf %54, %55 : vector<8x32xf32>
      %57 = vector.broadcast %37 : vector<1x32xf32> to vector<8x32xf32>
      %58 = arith.mulf %56, %57 : vector<8x32xf32>
      %59 = vector.broadcast %38 : vector<1x32xf32> to vector<8x32xf32>
      %60 = arith.addf %58, %59 : vector<8x32xf32>
      %c0_37 = arith.constant 0 : index
      %c0_38 = arith.constant 0 : index
      %c0_39 = arith.constant 0 : index
      %61 = vector.load %arg21[%c0_37, %c0_38, %c0_39] : memref<1x8x32xf32, #tpu.memory_space<vmem>>, vector<1x8x32xf32>
      %62 = vector.shape_cast %61 : vector<1x8x32xf32> to vector<8x32xf32>
      %63 = vector.shape_cast %60 : vector<8x32xf32> to vector<1x8x32xf32>
      tpu.vector_store %arg21[%c0_37, %c0_38, %c0_39], %63 {strides = array<i32>} : memref<1x8x32xf32, #tpu.memory_space<vmem>>, vector<1x8x32xf32>,
    } else {
    }
    return
  }
  func.func @transform_0(%arg0: i32, %arg1: i32, %arg2: i32) -> (i32, i32, i32) {
    %c0_i32 = arith.constant 0 : i32
    %c0_i32_0 = arith.constant 0 : i32
    return %arg0, %arg1, %c0_i32 : i32, i32, i32
  }
  func.func @transform_1(%arg0: i32, %arg1: i32, %arg2: i32) -> (i32, i32, i32) {
    %c0_i32 = arith.constant 0 : i32
    %c0_i32_0 = arith.constant 0 : i32
    %c0_i32_1 = arith.constant 0 : i32
    return %arg0, %c0_i32, %c0_i32_0 : i32, i32, i32
  }
  func.func @transform_2(%arg0: i32, %arg1: i32, %arg2: i32) -> (i32, i32) {
    %c0_i32 = arith.constant 0 : i32
    %c0_i32_0 = arith.constant 0 : i32
    %c0_i32_1 = arith.constant 0 : i32
    return %c0_i32, %c0_i32_0 : i32, i32
  }
  func.func @transform_3(%arg0: i32, %arg1: i32, %arg2: i32) -> (i32, i32) {
    %c0_i32 = arith.constant 0 : i32
    %c0_i32_0 = arith.constant 0 : i32
    %c0_i32_1 = arith.constant 0 : i32
    return %c0_i32, %c0_i32_0 : i32, i32
  }
  func.func @transform_4(%arg0: i32, %arg1: i32, %arg2: i32) -> (i32, i32) {
    %c0_i32 = arith.constant 0 : i32
    %c0_i32_0 = arith.constant 0 : i32
    %c0_i32_1 = arith.constant 0 : i32
    return %c0_i32, %c0_i32_0 : i32, i32
  }
  func.func @transform_5(%arg0: i32, %arg1: i32, %arg2: i32) -> (i32, i32) {
    %c0_i32 = arith.constant 0 : i32
    %c0_i32_0 = arith.constant 0 : i32
    %c0_i32_1 = arith.constant 0 : i32
    return %c0_i32, %c0_i32_0 : i32, i32
  }
  func.func @transform_6(%arg0: i32, %arg1: i32, %arg2: i32) -> (i32, i32) {
    %c0_i32 = arith.constant 0 : i32
    %c0_i32_0 = arith.constant 0 : i32
    %c0_i32_1 = arith.constant 0 : i32
    return %c0_i32, %c0_i32_0 : i32, i32
  }
  func.func @transform_7(%arg0: i32, %arg1: i32, %arg2: i32) -> (i32, i32) {
    %c0_i32 = arith.constant 0 : i32
    %c0_i32_0 = arith.constant 0 : i32
    %c0_i32_1 = arith.constant 0 : i32
    return %c0_i32, %c0_i32_0 : i32, i32
  }
  func.func @transform_8(%arg0: i32, %arg1: i32, %arg2: i32) -> (i32, i32) {
    %c0_i32 = arith.constant 0 : i32
    %c0_i32_0 = arith.constant 0 : i32
    %c0_i32_1 = arith.constant 0 : i32
    return %c0_i32, %c0_i32_0 : i32, i32
  }
  func.func @transform_9(%arg0: i32, %arg1: i32, %arg2: i32) -> (i32, i32) {
    %c0_i32 = arith.constant 0 : i32
    %c0_i32_0 = arith.constant 0 : i32
    %c0_i32_1 = arith.constant 0 : i32
    return %c0_i32, %c0_i32_0 : i32, i32
  }
  func.func @transform_10(%arg0: i32, %arg1: i32, %arg2: i32) -> (i32, i32) {
    %c0_i32 = arith.constant 0 : i32
    %c0_i32_0 = arith.constant 0 : i32
    %c0_i32_1 = arith.constant 0 : i32
    return %c0_i32, %c0_i32_0 : i32, i32
  }
  func.func @transform_11(%arg0: i32, %arg1: i32, %arg2: i32) -> (i32, i32) {
    %c0_i32 = arith.constant 0 : i32
    %c0_i32_0 = arith.constant 0 : i32
    %c0_i32_1 = arith.constant 0 : i32
    return %c0_i32, %c0_i32_0 : i32, i32
  }
  func.func @transform_12(%arg0: i32, %arg1: i32, %arg2: i32) -> (i32, i32) {
    %c0_i32 = arith.constant 0 : i32
    %c0_i32_0 = arith.constant 0 : i32
    return %c0_i32, %arg2 : i32, i32
  }
  func.func @transform_13(%arg0: i32, %arg1: i32, %arg2: i32) -> (i32, i32) {
    %c0_i32 = arith.constant 0 : i32
    %c0_i32_0 = arith.constant 0 : i32
    return %c0_i32, %arg2 : i32, i32
  }
  func.func @transform_14(%arg0: i32, %arg1: i32, %arg2: i32) -> (i32, i32) {
    %c0_i32 = arith.constant 0 : i32
    %c0_i32_0 = arith.constant 0 : i32
    return %arg2, %c0_i32 : i32, i32
  }
  func.func @transform_15(%arg0: i32, %arg1: i32, %arg2: i32) -> (i32, i32) {
    %c0_i32 = arith.constant 0 : i32
    %c0_i32_0 = arith.constant 0 : i32
    %c0_i32_1 = arith.constant 0 : i32
    return %c0_i32, %c0_i32_0 : i32, i32
  }
  func.func @transform_16(%arg0: i32, %arg1: i32, %arg2: i32) -> (i32, i32) {
    %c0_i32 = arith.constant 0 : i32
    %c0_i32_0 = arith.constant 0 : i32
    %c0_i32_1 = arith.constant 0 : i32
    return %c0_i32, %c0_i32_0 : i32, i32
  }
  func.func @transform_17(%arg0: i32, %arg1: i32, %arg2: i32) -> (i32, i32) {
    %c0_i32 = arith.constant 0 : i32
    %c0_i32_0 = arith.constant 0 : i32
    %c0_i32_1 = arith.constant 0 : i32
    return %c0_i32, %c0_i32_0 : i32, i32
  }
  func.func @transform_18(%arg0: i32, %arg1: i32, %arg2: i32) -> (i32, i32, i32) {
    %c0_i32 = arith.constant 0 : i32
    %c0_i32_0 = arith.constant 0 : i32
    return %arg0, %arg1, %c0_i32 : i32, i32, i32
  }
}

module attributes {stable_mosaic.version = 11 : i64} {
  func.func @bert_layer_kernel(%arg0: i32, %arg1: i32, %arg2: i32, %arg3: memref<1x8x32xf32, #tpu.memory_space<vmem>>, %arg4: memref<1x8x32xbf16, #tpu.memory_space<vmem>>, %arg5: memref<32x32xbf16, #tpu.memory_space<vmem>>, %arg6: memref<1x32xf32, #tpu.memory_space<vmem>>, %arg7: memref<32x32xbf16, #tpu.memory_space<vmem>>, %arg8: memref<1x32xf32, #tpu.memory_space<vmem>>, %arg9: memref<32x32xbf16, #tpu.memory_space<vmem>>, %arg10: memref<1x32xf32, #tpu.memory_space<vmem>>, %arg11: memref<32x32xbf16, #tpu.memory_space<vmem>>, %arg12: memref<1x32xf32, #tpu.memory_space<vmem>>, %arg13: memref<1x32xf32, #tpu.memory_space<vmem>>, %arg14: memref<1x32xf32, #tpu.memory_space<vmem>>, %arg15: memref<32x64xbf16, #tpu.memory_space<vmem>>, %arg16: memref<1x64xf32, #tpu.memory_space<vmem>>, %arg17: memref<64x32xbf16, #tpu.memory_space<vmem>>, %arg18: memref<1x32xf32, #tpu.memory_space<vmem>>, %arg19: memref<1x32xf32, #tpu.memory_space<vmem>>, %arg20: memref<1x32xf32, #tpu.memory_space<vmem>>, %arg21: memref<1x8x32xf32, #tpu.memory_space<vmem>>, %arg22: memref<8x32xbf16, #tpu.memory_space<vmem>>, %arg23: memref<8x32xbf16, #tpu.memory_space<vmem>>, %arg24: memref<8x32xbf16, #tpu.memory_space<vmem>>, %arg25: memref<8x32xf32, #tpu.memory_space<vmem>>, %arg26: memref<8x32xbf16, #tpu.memory_space<vmem>>, %arg27: memref<8x32xf32, #tpu.memory_space<vmem>>) attributes {dimension_semantics = [#tpu.dimension_semantics<parallel>, #tpu.dimension_semantics<arbitrary>, #tpu.dimension_semantics<arbitrary>], iteration_bounds = array<i64: 2, 1, 1>, scalar_prefetch = 0 : i64, scratch_operands = 6 : i64, tpu.core_type = #tpu.core_type<tc>, window_params = [{transform_indices = @transform_0, window_bounds = array<i64: 1, 8, 32>}, {transform_indices = @transform_1, window_bounds = array<i64: 1, 8, 32>}, {pipeline_mode = #tpu.pipeline_mode<synchronous>, transform_indices = @transform_2, window_bounds = array<i64: 32, 32>}, {pipeline_mode = #tpu.pipeline_mode<synchronous>, transform_indices = @transform_3, window_bounds = array<i64: 1, 32>}, {pipeline_mode = #tpu.pipeline_mode<synchronous>, transform_indices = @transform_4, window_bounds = array<i64: 32, 32>}, {pipeline_mode = #tpu.pipeline_mode<synchronous>, transform_indices = @transform_5, window_bounds = array<i64: 1, 32>}, {pipeline_mode = #tpu.pipeline_mode<synchronous>, transform_indices = @transform_6, window_bounds = array<i64: 32, 32>}, {pipeline_mode = #tpu.pipeline_mode<synchronous>, transform_indices = @transform_7, window_bounds = array<i64: 1, 32>}, {pipeline_mode = #tpu.pipeline_mode<synchronous>, transform_indices = @transform_8, window_bounds = array<i64: 32, 32>}, {pipeline_mode = #tpu.pipeline_mode<synchronous>, transform_indices = @transform_9, window_bounds = array<i64: 1, 32>}, {pipeline_mode = #tpu.pipeline_mode<synchronous>, transform_indices = @transform_10, window_bounds = array<i64: 1, 32>}, {pipeline_mode = #tpu.pipeline_mode<synchronous>, transform_indices = @transform_11, window_bounds = array<i64: 1, 32>}, {transform_indices = @transform_12, window_bounds = array<i64: 32, 64>}, {transform_indices = @transform_13, window_bounds = array<i64: 1, 64>}, {transform_indices = @transform_14, window_bounds = array<i64: 64, 32>}, {pipeline_mode = #tpu.pipeline_mode<synchronous>, transform_indices = @transform_15, window_bounds = array<i64: 1, 32>}, {pipeline_mode = #tpu.pipeline_mode<synchronous>, transform_indices = @transform_16, window_bounds = array<i64: 1, 32>}, {pipeline_mode = #tpu.pipeline_mode<synchronous>, transform_indices = @transform_17, window_bounds = array<i64: 1, 32>}, {transform_indices = @transform_18, window_bounds = array<i64: 1, 8, 32>}]} {
    %c0_i32 = arith.constant 0 : i32
    %0 = arith.cmpi eq, %arg2, %c0_i32 : i32
    %c0_i32_0 = arith.constant 0 : i32
    %1 = arith.cmpi eq, %arg1, %c0_i32_0 : i32
    %2 = arith.andi %0, %1 : i1
    %3 = arith.extui %2 : i1 to i32
    %c0_i32_1 = arith.constant 0 : i32
    %4 = arith.cmpi ne, %3, %c0_i32_1 : i32
    scf.if %4 {
      %c0_23 = arith.constant 0 : index
      %c0_24 = arith.constant 0 : index
      %c0_25 = arith.constant 0 : index
      %31 = vector.load %arg4[%c0_23, %c0_24, %c0_25] : memref<1x8x32xbf16, #tpu.memory_space<vmem>>, vector<1x8x32xbf16>
      %32 = vector.shape_cast %31 : vector<1x8x32xbf16> to vector<8x32xbf16>
      %c0_26 = arith.constant 0 : index
      %c0_27 = arith.constant 0 : index
      %33 = vector.load %arg7[%c0_26, %c0_27] : memref<32x32xbf16, #tpu.memory_space<vmem>>, vector<32x32xbf16>
      %cst_28 = arith.constant dense<0.000000e+00> : vector<8x32xf32>
      %34 = tpu.matmul %32, %33, %cst_28 {dimension_numbers = #tpu.dot_dimension_numbers<[1], [0], [0], [1], [0, 0, 1, 1], [], []>} : vector<8x32xbf16>, vector<32x32xbf16>, vector<8x32xf32> -> vector<8x32xf32>
      %c0_29 = arith.constant 0 : index
      %c0_30 = arith.constant 0 : index
      %35 = vector.load %arg8[%c0_29, %c0_30] : memref<1x32xf32, #tpu.memory_space<vmem>>, vector<1x32xf32>
      %36 = vector.broadcast %35 : vector<1x32xf32> to vector<8x32xf32>
      %37 = arith.addf %34, %36 : vector<8x32xf32>
      %c0_31 = arith.constant 0 : index
      %c0_32 = arith.constant 0 : index
      %38 = vector.load %arg9[%c0_31, %c0_32] : memref<32x32xbf16, #tpu.memory_space<vmem>>, vector<32x32xbf16>
      %cst_33 = arith.constant dense<0.000000e+00> : vector<8x32xf32>
      %39 = tpu.matmul %32, %38, %cst_33 {dimension_numbers = #tpu.dot_dimension_numbers<[1], [0], [0], [1], [0, 0, 1, 1], [], []>} : vector<8x32xbf16>, vector<32x32xbf16>, vector<8x32xf32> -> vector<8x32xf32>
      %c0_34 = arith.constant 0 : index
      %c0_35 = arith.constant 0 : index
      %40 = vector.load %arg10[%c0_34, %c0_35] : memref<1x32xf32, #tpu.memory_space<vmem>>, vector<1x32xf32>
      %41 = vector.broadcast %40 : vector<1x32xf32> to vector<8x32xf32>
      %42 = arith.addf %39, %41 : vector<8x32xf32>
      %43 = arith.truncf %37 : vector<8x32xf32> to vector<8x32xbf16>
      %c0_36 = arith.constant 0 : index
      %c0_37 = arith.constant 0 : index
      %44 = vector.load %arg22[%c0_36, %c0_37] : memref<8x32xbf16, #tpu.memory_space<vmem>>, vector<8x32xbf16>
      tpu.vector_store %arg22[%c0_36, %c0_37], %43 {strides = array<i32>} : memref<8x32xbf16, #tpu.memory_space<vmem>>, vector<8x32xbf16>,
      %45 = arith.truncf %42 : vector<8x32xf32> to vector<8x32xbf16>
      %c0_38 = arith.constant 0 : index
      %c0_39 = arith.constant 0 : index
      %46 = vector.load %arg23[%c0_38, %c0_39] : memref<8x32xbf16, #tpu.memory_space<vmem>>, vector<8x32xbf16>
      tpu.vector_store %arg23[%c0_38, %c0_39], %45 {strides = array<i32>} : memref<8x32xbf16, #tpu.memory_space<vmem>>, vector<8x32xbf16>,
    } else {
    }
    %c0_i32_2 = arith.constant 0 : i32
    %5 = arith.cmpi eq, %arg2, %c0_i32_2 : i32
    %6 = arith.extui %5 : i1 to i32
    %cst = arith.constant 9.99999996E-13 : f32
    %c0_i32_3 = arith.constant 0 : i32
    %7 = arith.cmpi ne, %6, %c0_i32_3 : i32
    scf.if %7 {
      %c0_23 = arith.constant 0 : index
      %c0_24 = arith.constant 0 : index
      %c0_25 = arith.constant 0 : index
      %31 = vector.load %arg3[%c0_23, %c0_24, %c0_25] : memref<1x8x32xf32, #tpu.memory_space<vmem>>, vector<1x8x32xf32>
      %32 = vector.shape_cast %31 : vector<1x8x32xf32> to vector<8x32xf32>
      %33 = arith.truncf %32 : vector<8x32xf32> to vector<8x32xbf16>
      %c0_26 = arith.constant 0 : index
      %c0_27 = arith.constant 0 : index
      %34 = vector.load %arg5[%c0_26, %c0_27] : memref<32x32xbf16, #tpu.memory_space<vmem>>, vector<32x32xbf16>
      %cst_28 = arith.constant dense<0.000000e+00> : vector<8x32xf32>
      %35 = tpu.matmul %33, %34, %cst_28 {dimension_numbers = #tpu.dot_dimension_numbers<[1], [0], [0], [1], [0, 0, 1, 1], [], []>} : vector<8x32xbf16>, vector<32x32xbf16>, vector<8x32xf32> -> vector<8x32xf32>
      %c0_29 = arith.constant 0 : index
      %c0_30 = arith.constant 0 : index
      %36 = vector.load %arg6[%c0_29, %c0_30] : memref<1x32xf32, #tpu.memory_space<vmem>>, vector<1x32xf32>
      %37 = vector.broadcast %36 : vector<1x32xf32> to vector<8x32xf32>
      %38 = arith.addf %35, %37 : vector<8x32xf32>
      %cst_31 = arith.constant 0.353553385 : f32
      %39 = vector.broadcast %cst_31 : f32 to vector<8x32xf32>
      %40 = arith.mulf %38, %39 : vector<8x32xf32>
      %41 = arith.truncf %40 : vector<8x32xf32> to vector<8x32xbf16>
      %c0_32 = arith.constant 0 : index
      %c0_33 = arith.constant 0 : index
      %42 = vector.load %arg24[%c0_32, %c0_33] : memref<8x32xbf16, #tpu.memory_space<vmem>>, vector<8x32xbf16>
      tpu.vector_store %arg24[%c0_32, %c0_33], %41 {strides = array<i32>} : memref<8x32xbf16, #tpu.memory_space<vmem>>, vector<8x32xbf16>,
      %cst_34 = arith.constant 0.000000e+00 : f32
      %43 = vector.broadcast %cst_34 : f32 to vector<8x32xf32>
      %c0_35 = arith.constant 0 : index
      %c0_36 = arith.constant 0 : index
      %44 = vector.load %arg24[%c0_35, %c0_36] : memref<8x32xbf16, #tpu.memory_space<vmem>>, vector<8x8xbf16>
      %c0_37 = arith.constant 0 : index
      %c0_38 = arith.constant 0 : index
      %45 = vector.load %arg22[%c0_37, %c0_38] : memref<8x32xbf16, #tpu.memory_space<vmem>>, vector<8x8xbf16>
      %c0_39 = arith.constant 0 : index
      %c0_40 = arith.constant 0 : index
      %46 = vector.load %arg23[%c0_39, %c0_40] : memref<8x32xbf16, #tpu.memory_space<vmem>>, vector<8x8xbf16>
      "tpu.trace_start"() <{level = 10 : i32, message = "qd,kd->qk"}> : () -> ()
      %cst_41 = arith.constant dense<0.000000e+00> : vector<8x8xf32>
      %47 = tpu.matmul %44, %45, %cst_41 {dimension_numbers = #tpu.dot_dimension_numbers<[1], [1], [0], [0], [0, 0, 1, 0], [], []>} : vector<8x8xbf16>, vector<8x8xbf16>, vector<8x8xf32> -> vector<8x8xf32>
      "tpu.trace_stop"() : () -> ()
      %cst_42 = arith.constant dense<0xFF800000> : vector<8xf32>
      %48 = vector.multi_reduction <maximumf>, %47, %cst_42 [1] : vector<8x8xf32> to vector<8xf32>
      %49 = vector.shape_cast %48 : vector<8xf32> to vector<8x1xf32>
      %50 = vector.broadcast %49 : vector<8x1xf32> to vector<8x8xf32>
      %51 = arith.subf %47, %50 : vector<8x8xf32>
      %52 = math.exp %51 : vector<8x8xf32>
      %cst_43 = arith.constant dense<0.000000e+00> : vector<8xf32>
      %53 = vector.multi_reduction <add>, %52, %cst_43 [1] : vector<8x8xf32> to vector<8xf32>
      %54 = vector.shape_cast %53 : vector<8xf32> to vector<8x1xf32>
      %55 = tpu.reciprocal %54 {approx = true} : vector<8x1xf32> -> vector<8x1xf32>
      %56 = vector.broadcast %55 : vector<8x1xf32> to vector<8x8xf32>
      %57 = arith.mulf %52, %56 : vector<8x8xf32>
      %58 = arith.truncf %57 : vector<8x8xf32> to vector<8x8xbf16>
      %cst_44 = arith.constant dense<0.000000e+00> : vector<8x8xf32>
      %59 = tpu.matmul %58, %46, %cst_44 {dimension_numbers = #tpu.dot_dimension_numbers<[1], [0], [0], [1], [0, 0, 1, 1], [], []>} : vector<8x8xbf16>, vector<8x8xbf16>, vector<8x8xf32> -> vector<8x8xf32>
      %60 = arith.truncf %59 : vector<8x8xf32> to vector<8x8xbf16>
      %c0_45 = arith.constant 0 : index
      %c0_46 = arith.constant 0 : index
      %61 = vector.load %arg11[%c0_45, %c0_46] : memref<32x32xbf16, #tpu.memory_space<vmem>>, vector<8x32xbf16>
      %cst_47 = arith.constant dense<0.000000e+00> : vector<8x32xf32>
      %62 = tpu.matmul %60, %61, %cst_47 {dimension_numbers = #tpu.dot_dimension_numbers<[1], [0], [0], [1], [0, 0, 1, 1], [], []>} : vector<8x8xbf16>, vector<8x32xbf16>, vector<8x32xf32> -> vector<8x32xf32>
      %63 = arith.addf %43, %62 : vector<8x32xf32>
      %c0_48 = arith.constant 0 : index
      %c8 = arith.constant 8 : index
      %64 = vector.load %arg24[%c0_48, %c8] : memref<8x32xbf16, #tpu.memory_space<vmem>>, vector<8x8xbf16>
      %c0_49 = arith.constant 0 : index
      %c8_50 = arith.constant 8 : index
      %65 = vector.load %arg22[%c0_49, %c8_50] : memref<8x32xbf16, #tpu.memory_space<vmem>>, vector<8x8xbf16>
      %c0_51 = arith.constant 0 : index
      %c8_52 = arith.constant 8 : index
      %66 = vector.load %arg23[%c0_51, %c8_52] : memref<8x32xbf16, #tpu.memory_space<vmem>>, vector<8x8xbf16>
      "tpu.trace_start"() <{level = 10 : i32, message = "qd,kd->qk"}> : () -> ()
      %cst_53 = arith.constant dense<0.000000e+00> : vector<8x8xf32>
      %67 = tpu.matmul %64, %65, %cst_53 {dimension_numbers = #tpu.dot_dimension_numbers<[1], [1], [0], [0], [0, 0, 1, 0], [], []>} : vector<8x8xbf16>, vector<8x8xbf16>, vector<8x8xf32> -> vector<8x8xf32>
      "tpu.trace_stop"() : () -> ()
      %cst_54 = arith.constant dense<0xFF800000> : vector<8xf32>
      %68 = vector.multi_reduction <maximumf>, %67, %cst_54 [1] : vector<8x8xf32> to vector<8xf32>
      %69 = vector.shape_cast %68 : vector<8xf32> to vector<8x1xf32>
      %70 = vector.broadcast %69 : vector<8x1xf32> to vector<8x8xf32>
      %71 = arith.subf %67, %70 : vector<8x8xf32>
      %72 = math.exp %71 : vector<8x8xf32>
      %cst_55 = arith.constant dense<0.000000e+00> : vector<8xf32>
      %73 = vector.multi_reduction <add>, %72, %cst_55 [1] : vector<8x8xf32> to vector<8xf32>
      %74 = vector.shape_cast %73 : vector<8xf32> to vector<8x1xf32>
      %75 = tpu.reciprocal %74 {approx = true} : vector<8x1xf32> -> vector<8x1xf32>
      %76 = vector.broadcast %75 : vector<8x1xf32> to vector<8x8xf32>
      %77 = arith.mulf %72, %76 : vector<8x8xf32>
      %78 = arith.truncf %77 : vector<8x8xf32> to vector<8x8xbf16>
      %cst_56 = arith.constant dense<0.000000e+00> : vector<8x8xf32>
      %79 = tpu.matmul %78, %66, %cst_56 {dimension_numbers = #tpu.dot_dimension_numbers<[1], [0], [0], [1], [0, 0, 1, 1], [], []>} : vector<8x8xbf16>, vector<8x8xbf16>, vector<8x8xf32> -> vector<8x8xf32>
      %80 = arith.truncf %79 : vector<8x8xf32> to vector<8x8xbf16>
      %c8_57 = arith.constant 8 : index
      %c0_58 = arith.constant 0 : index
      %81 = vector.load %arg11[%c8_57, %c0_58] : memref<32x32xbf16, #tpu.memory_space<vmem>>, vector<8x32xbf16>
      %cst_59 = arith.constant dense<0.000000e+00> : vector<8x32xf32>
      %82 = tpu.matmul %80, %81, %cst_59 {dimension_numbers = #tpu.dot_dimension_numbers<[1], [0], [0], [1], [0, 0, 1, 1], [], []>} : vector<8x8xbf16>, vector<8x32xbf16>, vector<8x32xf32> -> vector<8x32xf32>
      %83 = arith.addf %63, %82 : vector<8x32xf32>
      %c0_60 = arith.constant 0 : index
      %c16 = arith.constant 16 : index
      %84 = vector.load %arg24[%c0_60, %c16] : memref<8x32xbf16, #tpu.memory_space<vmem>>, vector<8x8xbf16>
      %c0_61 = arith.constant 0 : index
      %c16_62 = arith.constant 16 : index
      %85 = vector.load %arg22[%c0_61, %c16_62] : memref<8x32xbf16, #tpu.memory_space<vmem>>, vector<8x8xbf16>
      %c0_63 = arith.constant 0 : index
      %c16_64 = arith.constant 16 : index
      %86 = vector.load %arg23[%c0_63, %c16_64] : memref<8x32xbf16, #tpu.memory_space<vmem>>, vector<8x8xbf16>
      "tpu.trace_start"() <{level = 10 : i32, message = "qd,kd->qk"}> : () -> ()
      %cst_65 = arith.constant dense<0.000000e+00> : vector<8x8xf32>
      %87 = tpu.matmul %84, %85, %cst_65 {dimension_numbers = #tpu.dot_dimension_numbers<[1], [1], [0], [0], [0, 0, 1, 0], [], []>} : vector<8x8xbf16>, vector<8x8xbf16>, vector<8x8xf32> -> vector<8x8xf32>
      "tpu.trace_stop"() : () -> ()
      %cst_66 = arith.constant dense<0xFF800000> : vector<8xf32>
      %88 = vector.multi_reduction <maximumf>, %87, %cst_66 [1] : vector<8x8xf32> to vector<8xf32>
      %89 = vector.shape_cast %88 : vector<8xf32> to vector<8x1xf32>
      %90 = vector.broadcast %89 : vector<8x1xf32> to vector<8x8xf32>
      %91 = arith.subf %87, %90 : vector<8x8xf32>
      %92 = math.exp %91 : vector<8x8xf32>
      %cst_67 = arith.constant dense<0.000000e+00> : vector<8xf32>
      %93 = vector.multi_reduction <add>, %92, %cst_67 [1] : vector<8x8xf32> to vector<8xf32>
      %94 = vector.shape_cast %93 : vector<8xf32> to vector<8x1xf32>
      %95 = tpu.reciprocal %94 {approx = true} : vector<8x1xf32> -> vector<8x1xf32>
      %96 = vector.broadcast %95 : vector<8x1xf32> to vector<8x8xf32>
      %97 = arith.mulf %92, %96 : vector<8x8xf32>
      %98 = arith.truncf %97 : vector<8x8xf32> to vector<8x8xbf16>
      %cst_68 = arith.constant dense<0.000000e+00> : vector<8x8xf32>
      %99 = tpu.matmul %98, %86, %cst_68 {dimension_numbers = #tpu.dot_dimension_numbers<[1], [0], [0], [1], [0, 0, 1, 1], [], []>} : vector<8x8xbf16>, vector<8x8xbf16>, vector<8x8xf32> -> vector<8x8xf32>
      %100 = arith.truncf %99 : vector<8x8xf32> to vector<8x8xbf16>
      %c16_69 = arith.constant 16 : index
      %c0_70 = arith.constant 0 : index
      %101 = vector.load %arg11[%c16_69, %c0_70] : memref<32x32xbf16, #tpu.memory_space<vmem>>, vector<8x32xbf16>
      %cst_71 = arith.constant dense<0.000000e+00> : vector<8x32xf32>
      %102 = tpu.matmul %100, %101, %cst_71 {dimension_numbers = #tpu.dot_dimension_numbers<[1], [0], [0], [1], [0, 0, 1, 1], [], []>} : vector<8x8xbf16>, vector<8x32xbf16>, vector<8x32xf32> -> vector<8x32xf32>
      %103 = arith.addf %83, %102 : vector<8x32xf32>
      %c0_72 = arith.constant 0 : index
      %c24 = arith.constant 24 : index
      %104 = vector.load %arg24[%c0_72, %c24] : memref<8x32xbf16, #tpu.memory_space<vmem>>, vector<8x8xbf16>
      %c0_73 = arith.constant 0 : index
      %c24_74 = arith.constant 24 : index
      %105 = vector.load %arg22[%c0_73, %c24_74] : memref<8x32xbf16, #tpu.memory_space<vmem>>, vector<8x8xbf16>
      %c0_75 = arith.constant 0 : index
      %c24_76 = arith.constant 24 : index
      %106 = vector.load %arg23[%c0_75, %c24_76] : memref<8x32xbf16, #tpu.memory_space<vmem>>, vector<8x8xbf16>
      "tpu.trace_start"() <{level = 10 : i32, message = "qd,kd->qk"}> : () -> ()
      %cst_77 = arith.constant dense<0.000000e+00> : vector<8x8xf32>
      %107 = tpu.matmul %104, %105, %cst_77 {dimension_numbers = #tpu.dot_dimension_numbers<[1], [1], [0], [0], [0, 0, 1, 0], [], []>} : vector<8x8xbf16>, vector<8x8xbf16>, vector<8x8xf32> -> vector<8x8xf32>
      "tpu.trace_stop"() : () -> ()
      %cst_78 = arith.constant dense<0xFF800000> : vector<8xf32>
      %108 = vector.multi_reduction <maximumf>, %107, %cst_78 [1] : vector<8x8xf32> to vector<8xf32>
      %109 = vector.shape_cast %108 : vector<8xf32> to vector<8x1xf32>
      %110 = vector.broadcast %109 : vector<8x1xf32> to vector<8x8xf32>
      %111 = arith.subf %107, %110 : vector<8x8xf32>
      %112 = math.exp %111 : vector<8x8xf32>
      %cst_79 = arith.constant dense<0.000000e+00> : vector<8xf32>
      %113 = vector.multi_reduction <add>, %112, %cst_79 [1] : vector<8x8xf32> to vector<8xf32>
      %114 = vector.shape_cast %113 : vector<8xf32> to vector<8x1xf32>
      %115 = tpu.reciprocal %114 {approx = true} : vector<8x1xf32> -> vector<8x1xf32>
      %116 = vector.broadcast %115 : vector<8x1xf32> to vector<8x8xf32>
      %117 = arith.mulf %112, %116 : vector<8x8xf32>
      %118 = arith.truncf %117 : vector<8x8xf32> to vector<8x8xbf16>
      %cst_80 = arith.constant dense<0.000000e+00> : vector<8x8xf32>
      %119 = tpu.matmul %118, %106, %cst_80 {dimension_numbers = #tpu.dot_dimension_numbers<[1], [0], [0], [1], [0, 0, 1, 1], [], []>} : vector<8x8xbf16>, vector<8x8xbf16>, vector<8x8xf32> -> vector<8x8xf32>
      %120 = arith.truncf %119 : vector<8x8xf32> to vector<8x8xbf16>
      %c24_81 = arith.constant 24 : index
      %c0_82 = arith.constant 0 : index
      %121 = vector.load %arg11[%c24_81, %c0_82] : memref<32x32xbf16, #tpu.memory_space<vmem>>, vector<8x32xbf16>
      %cst_83 = arith.constant dense<0.000000e+00> : vector<8x32xf32>
      %122 = tpu.matmul %120, %121, %cst_83 {dimension_numbers = #tpu.dot_dimension_numbers<[1], [0], [0], [1], [0, 0, 1, 1], [], []>} : vector<8x8xbf16>, vector<8x32xbf16>, vector<8x32xf32> -> vector<8x32xf32>
      %123 = arith.addf %103, %122 : vector<8x32xf32>
      %c0_84 = arith.constant 0 : index
      %c0_85 = arith.constant 0 : index
      %124 = vector.load %arg12[%c0_84, %c0_85] : memref<1x32xf32, #tpu.memory_space<vmem>>, vector<1x32xf32>
      %125 = vector.broadcast %124 : vector<1x32xf32> to vector<8x32xf32>
      %126 = arith.addf %123, %125 : vector<8x32xf32>
      %127 = arith.addf %126, %32 : vector<8x32xf32>
      %c0_86 = arith.constant 0 : index
      %c0_87 = arith.constant 0 : index
      %128 = vector.load %arg13[%c0_86, %c0_87] : memref<1x32xf32, #tpu.memory_space<vmem>>, vector<1x32xf32>
      %c0_88 = arith.constant 0 : index
      %c0_89 = arith.constant 0 : index
      %129 = vector.load %arg14[%c0_88, %c0_89] : memref<1x32xf32, #tpu.memory_space<vmem>>, vector<1x32xf32>
      %cst_90 = arith.constant dense<0.000000e+00> : vector<8xf32>
      %130 = vector.multi_reduction <add>, %127, %cst_90 [1] : vector<8x32xf32> to vector<8xf32>
      %131 = vector.shape_cast %130 : vector<8xf32> to vector<8x1xf32>
      %cst_91 = arith.constant 3.200000e+01 : f32
      %132 = vector.broadcast %cst_91 : f32 to vector<8x1xf32>
      %133 = arith.divf %131, %132 : vector<8x1xf32>
      %134 = vector.broadcast %133 : vector<8x1xf32> to vector<8x32xf32>
      %135 = arith.subf %127, %134 : vector<8x32xf32>
      %136 = arith.mulf %135, %135 : vector<8x32xf32>
      %cst_92 = arith.constant dense<0.000000e+00> : vector<8xf32>
      %137 = vector.multi_reduction <add>, %136, %cst_92 [1] : vector<8x32xf32> to vector<8xf32>
      %138 = vector.shape_cast %137 : vector<8xf32> to vector<8x1xf32>
      %cst_93 = arith.constant 3.200000e+01 : f32
      %139 = vector.broadcast %cst_93 : f32 to vector<8x1xf32>
      %140 = arith.divf %138, %139 : vector<8x1xf32>
      %141 = vector.broadcast %cst : f32 to vector<8x1xf32>
      %142 = arith.addf %140, %141 : vector<8x1xf32>
      %143 = math.rsqrt %142 : vector<8x1xf32>
      %144 = vector.broadcast %133 : vector<8x1xf32> to vector<8x32xf32>
      %145 = arith.subf %127, %144 : vector<8x32xf32>
      %146 = vector.broadcast %143 : vector<8x1xf32> to vector<8x32xf32>
      %147 = arith.mulf %145, %146 : vector<8x32xf32>
      %148 = vector.broadcast %128 : vector<1x32xf32> to vector<8x32xf32>
      %149 = arith.mulf %147, %148 : vector<8x32xf32>
      %150 = vector.broadcast %129 : vector<1x32xf32> to vector<8x32xf32>
      %151 = arith.addf %149, %150 : vector<8x32xf32>
      %c0_94 = arith.constant 0 : index
      %c0_95 = arith.constant 0 : index
      %152 = vector.load %arg25[%c0_94, %c0_95] : memref<8x32xf32, #tpu.memory_space<vmem>>, vector<8x32xf32>
      tpu.vector_store %arg25[%c0_94, %c0_95], %151 {strides = array<i32>} : memref<8x32xf32, #tpu.memory_space<vmem>>, vector<8x32xf32>,
      %153 = arith.truncf %151 : vector<8x32xf32> to vector<8x32xbf16>
      %c0_96 = arith.constant 0 : index
      %c0_97 = arith.constant 0 : index
      %154 = vector.load %arg26[%c0_96, %c0_97] : memref<8x32xbf16, #tpu.memory_space<vmem>>, vector<8x32xbf16>
      tpu.vector_store %arg26[%c0_96, %c0_97], %153 {strides = array<i32>} : memref<8x32xbf16, #tpu.memory_space<vmem>>, vector<8x32xbf16>,
      %cst_98 = arith.constant 0.000000e+00 : f32
      %155 = vector.broadcast %cst_98 : f32 to vector<8x32xf32>
      %c0_99 = arith.constant 0 : index
      %c0_100 = arith.constant 0 : index
      %156 = vector.load %arg27[%c0_99, %c0_100] : memref<8x32xf32, #tpu.memory_space<vmem>>, vector<8x32xf32>
      tpu.vector_store %arg27[%c0_99, %c0_100], %155 {strides = array<i32>} : memref<8x32xf32, #tpu.memory_space<vmem>>, vector<8x32xf32>,
    } else {
    }
    %c0 = arith.constant 0 : index
    %c0_4 = arith.constant 0 : index
    %8 = vector.load %arg26[%c0, %c0_4] : memref<8x32xbf16, #tpu.memory_space<vmem>>, vector<8x32xbf16>
    %c0_5 = arith.constant 0 : index
    %c0_6 = arith.constant 0 : index
    %9 = vector.load %arg15[%c0_5, %c0_6] : memref<32x64xbf16, #tpu.memory_space<vmem>>, vector<32x64xbf16>
    %cst_7 = arith.constant dense<0.000000e+00> : vector<8x64xf32>
    %10 = tpu.matmul %8, %9, %cst_7 {dimension_numbers = #tpu.dot_dimension_numbers<[1], [0], [0], [1], [0, 0, 1, 1], [], []>} : vector<8x32xbf16>, vector<32x64xbf16>, vector<8x64xf32> -> vector<8x64xf32>
    %c0_8 = arith.constant 0 : index
    %c0_9 = arith.constant 0 : index
    %11 = vector.load %arg16[%c0_8, %c0_9] : memref<1x64xf32, #tpu.memory_space<vmem>>, vector<1x64xf32>
    %12 = vector.broadcast %11 : vector<1x64xf32> to vector<8x64xf32>
    %13 = arith.addf %10, %12 : vector<8x64xf32>
    %cst_10 = arith.constant 5.000000e-01 : f32
    %14 = vector.broadcast %cst_10 : f32 to vector<8x64xf32>
    %15 = arith.mulf %14, %13 : vector<8x64xf32>
    %cst_11 = arith.constant 0.707106769 : f32
    %16 = vector.broadcast %cst_11 : f32 to vector<8x64xf32>
    %17 = arith.mulf %13, %16 : vector<8x64xf32>
    %18 = math.erf %17 : vector<8x64xf32>
    %cst_12 = arith.constant 1.000000e+00 : f32
    %19 = vector.broadcast %cst_12 : f32 to vector<8x64xf32>
    %20 = arith.addf %19, %18 : vector<8x64xf32>
    %21 = arith.mulf %15, %20 : vector<8x64xf32>
    %c0_13 = arith.constant 0 : index
    %c0_14 = arith.constant 0 : index
    %22 = vector.load %arg27[%c0_13, %c0_14] : memref<8x32xf32, #tpu.memory_space<vmem>>, vector<8x32xf32>
    %23 = arith.truncf %21 : vector<8x64xf32> to vector<8x64xbf16>
    %c0_15 = arith.constant 0 : index
    %c0_16 = arith.constant 0 : index
    %24 = vector.load %arg17[%c0_15, %c0_16] : memref<64x32xbf16, #tpu.memory_space<vmem>>, vector<64x32xbf16>
    %cst_17 = arith.constant dense<0.000000e+00> : vector<8x32xf32>
    %25 = tpu.matmul %23, %24, %cst_17 {dimension_numbers = #tpu.dot_dimension_numbers<[1], [0], [0], [1], [0, 0, 1, 1], [], []>} : vector<8x64xbf16>, vector<64x32xbf16>, vector<8x32xf32> -> vector<8x32xf32>
    %26 = arith.addf %22, %25 : vector<8x32xf32>
    %c0_18 = arith.constant 0 : index
    %c0_19 = arith.constant 0 : index
    %27 = vector.load %arg27[%c0_18, %c0_19] : memref<8x32xf32, #tpu.memory_space<vmem>>, vector<8x32xf32>
    tpu.vector_store %arg27[%c0_18, %c0_19], %26 {strides = array<i32>} : memref<8x32xf32, #tpu.memory_space<vmem>>, vector<8x32xf32>,
    %c0_i32_20 = arith.constant 0 : i32
    %28 = arith.cmpi eq, %arg2, %c0_i32_20 : i32
    %29 = arith.extui %28 : i1 to i32
    %cst_21 = arith.constant 9.99999996E-13 : f32
    %c0_i32_22 = arith.constant 0 : i32
    %30 = arith.cmpi ne, %29, %c0_i32_22 : i32
    scf.if %30 {
      %c0_23 = arith.constant 0 : index
      %c0_24 = arith.constant 0 : index
      %31 = vector.load %arg27[%c0_23, %c0_24] : memref<8x32xf32, #tpu.memory_space<vmem>>, vector<8x32xf32>
      %c0_25 = arith.constant 0 : index
      %c0_26 = arith.constant 0 : index
      %32 = vector.load %arg18[%c0_25, %c0_26] : memref<1x32xf32, #tpu.memory_space<vmem>>, vector<1x32xf32>
      %33 = vector.broadcast %32 : vector<1x32xf32> to vector<8x32xf32>
      %34 = arith.addf %31, %33 : vector<8x32xf32>
      %c0_27 = arith.constant 0 : index
      %c0_28 = arith.constant 0 : index
      %35 = vector.load %arg25[%c0_27, %c0_28] : memref<8x32xf32, #tpu.memory_space<vmem>>, vector<8x32xf32>
      %36 = arith.addf %34, %35 : vector<8x32xf32>
      %c0_29 = arith.constant 0 : index
      %c0_30 = arith.constant 0 : index
      %37 = vector.load %arg19[%c0_29, %c0_30] : memref<1x32xf32, #tpu.memory_space<vmem>>, vector<1x32xf32>
      %c0_31 = arith.constant 0 : index
      %c0_32 = arith.constant 0 : index
      %38 = vector.load %arg20[%c0_31, %c0_32] : memref<1x32xf32, #tpu.memory_space<vmem>>, vector<1x32xf32>
      %cst_33 = arith.constant dense<0.000000e+00> : vector<8xf32>
      %39 = vector.multi_reduction <add>, %36, %cst_33 [1] : vector<8x32xf32> to vector<8xf32>
      %40 = vector.shape_cast %39 : vector<8xf32> to vector<8x1xf32>
      %cst_34 = arith.constant 3.200000e+01 : f32
      %41 = vector.broadcast %cst_34 : f32 to vector<8x1xf32>
      %42 = arith.divf %40, %41 : vector<8x1xf32>
      %43 = vector.broadcast %42 : vector<8x1xf32> to vector<8x32xf32>
      %44 = arith.subf %36, %43 : vector<8x32xf32>
      %45 = arith.mulf %44, %44 : vector<8x32xf32>
      %cst_35 = arith.constant dense<0.000000e+00> : vector<8xf32>
      %46 = vector.multi_reduction <add>, %45, %cst_35 [1] : vector<8x32xf32> to vector<8xf32>
      %47 = vector.shape_cast %46 : vector<8xf32> to vector<8x1xf32>
      %cst_36 = arith.constant 3.200000e+01 : f32
      %48 = vector.broadcast %cst_36 : f32 to vector<8x1xf32>
      %49 = arith.divf %47, %48 : vector<8x1xf32>
      %50 = vector.broadcast %cst_21 : f32 to vector<8x1xf32>
      %51 = arith.addf %49, %50 : vector<8x1xf32>
      %52 = math.rsqrt %51 : vector<8x1xf32>
      %53 = vector.broadcast %42 : vector<8x1xf32> to vector<8x32xf32>
      %54 = arith.subf %36, %53 : vector<8x32xf32>
      %55 = vector.broadcast %52 : vector<8x1xf32> to vector<8x32xf32>
      %56 = arith.mulf %54, %55 : vector<8x32xf32>
      %57 = vector.broadcast %37 : vector<1x32xf32> to vector<8x32xf32>
      %58 = arith.mulf %56, %57 : vector<8x32xf32>
      %59 = vector.broadcast %38 : vector<1x32xf32> to vector<8x32xf32>
      %60 = arith.addf %58, %59 : vector<8x32xf32>
      %c0_37 = arith.constant 0 : index
      %c0_38 = arith.constant 0 : index
      %c0_39 = arith.constant 0 : index
      %61 = vector.load %arg21[%c0_37, %c0_38, %c0_39] : memref<1x8x32xf32, #tpu.memory_space<vmem>>, vector<1x8x32xf32>
      %62 = vector.shape_cast %61 : vector<1x8x32xf32> to vector<8x32xf32>
      %63 = vector.shape_cast %60 : vector<8x32xf32> to vector<1x8x32xf32>
      tpu.vector_store %arg21[%c0_37, %c0_38, %c0_39], %63 {strides = array<i32>} : memref<1x8x32xf32, #tpu.memory_space<vmem>>, vector<1x8x32xf32>,
    } else {
    }
    return
  }
  func.func @transform_0(%arg0: i32, %arg1: i32, %arg2: i32) -> (i32, i32, i32) {
    %c0_i32 = arith.constant 0 : i32
    %c0_i32_0 = arith.constant 0 : i32
    return %arg0, %arg1, %c0_i32 : i32, i32, i32
  }
  func.func @transform_1(%arg0: i32, %arg1: i32, %arg2: i32) -> (i32, i32, i32) {
    %c0_i32 = arith.constant 0 : i32
    %c0_i32_0 = arith.constant 0 : i32
    %c0_i32_1 = arith.constant 0 : i32
    return %arg0, %c0_i32, %c0_i32_0 : i32, i32, i32
  }
  func.func @transform_2(%arg0: i32, %arg1: i32, %arg2: i32) -> (i32, i32) {
    %c0_i32 = arith.constant 0 : i32
    %c0_i32_0 = arith.constant 0 : i32
    %c0_i32_1 = arith.constant 0 : i32
    return %c0_i32, %c0_i32_0 : i32, i32
  }
  func.func @transform_3(%arg0: i32, %arg1: i32, %arg2: i32) -> (i32, i32) {
    %c0_i32 = arith.constant 0 : i32
    %c0_i32_0 = arith.constant 0 : i32
    %c0_i32_1 = arith.constant 0 : i32
    return %c0_i32, %c0_i32_0 : i32, i32
  }
  func.func @transform_4(%arg0: i32, %arg1: i32, %arg2: i32) -> (i32, i32) {
    %c0_i32 = arith.constant 0 : i32
    %c0_i32_0 = arith.constant 0 : i32
    %c0_i32_1 = arith.constant 0 : i32
    return %c0_i32, %c0_i32_0 : i32, i32
  }
  func.func @transform_5(%arg0: i32, %arg1: i32, %arg2: i32) -> (i32, i32) {
    %c0_i32 = arith.constant 0 : i32
    %c0_i32_0 = arith.constant 0 : i32
    %c0_i32_1 = arith.constant 0 : i32
    return %c0_i32, %c0_i32_0 : i32, i32
  }
  func.func @transform_6(%arg0: i32, %arg1: i32, %arg2: i32) -> (i32, i32) {
    %c0_i32 = arith.constant 0 : i32
    %c0_i32_0 = arith.constant 0 : i32
    %c0_i32_1 = arith.constant 0 : i32
    return %c0_i32, %c0_i32_0 : i32, i32
  }
  func.func @transform_7(%arg0: i32, %arg1: i32, %arg2: i32) -> (i32, i32) {
    %c0_i32 = arith.constant 0 : i32
    %c0_i32_0 = arith.constant 0 : i32
    %c0_i32_1 = arith.constant 0 : i32
    return %c0_i32, %c0_i32_0 : i32, i32
  }
  func.func @transform_8(%arg0: i32, %arg1: i32, %arg2: i32) -> (i32, i32) {
    %c0_i32 = arith.constant 0 : i32
    %c0_i32_0 = arith.constant 0 : i32
    %c0_i32_1 = arith.constant 0 : i32
    return %c0_i32, %c0_i32_0 : i32, i32
  }
  func.func @transform_9(%arg0: i32, %arg1: i32, %arg2: i32) -> (i32, i32) {
    %c0_i32 = arith.constant 0 : i32
    %c0_i32_0 = arith.constant 0 : i32
    %c0_i32_1 = arith.constant 0 : i32
    return %c0_i32, %c0_i32_0 : i32, i32
  }
  func.func @transform_10(%arg0: i32, %arg1: i32, %arg2: i32) -> (i32, i32) {
    %c0_i32 = arith.constant 0 : i32
    %c0_i32_0 = arith.constant 0 : i32
    %c0_i32_1 = arith.constant 0 : i32
    return %c0_i32, %c0_i32_0 : i32, i32
  }
  func.func @transform_11(%arg0: i32, %arg1: i32, %arg2: i32) -> (i32, i32) {
    %c0_i32 = arith.constant 0 : i32
    %c0_i32_0 = arith.constant 0 : i32
    %c0_i32_1 = arith.constant 0 : i32
    return %c0_i32, %c0_i32_0 : i32, i32
  }
  func.func @transform_12(%arg0: i32, %arg1: i32, %arg2: i32) -> (i32, i32) {
    %c0_i32 = arith.constant 0 : i32
    %c0_i32_0 = arith.constant 0 : i32
    return %c0_i32, %arg2 : i32, i32
  }
  func.func @transform_13(%arg0: i32, %arg1: i32, %arg2: i32) -> (i32, i32) {
    %c0_i32 = arith.constant 0 : i32
    %c0_i32_0 = arith.constant 0 : i32
    return %c0_i32, %arg2 : i32, i32
  }
  func.func @transform_14(%arg0: i32, %arg1: i32, %arg2: i32) -> (i32, i32) {
    %c0_i32 = arith.constant 0 : i32
    %c0_i32_0 = arith.constant 0 : i32
    return %arg2, %c0_i32 : i32, i32
  }
  func.func @transform_15(%arg0: i32, %arg1: i32, %arg2: i32) -> (i32, i32) {
    %c0_i32 = arith.constant 0 : i32
    %c0_i32_0 = arith.constant 0 : i32
    %c0_i32_1 = arith.constant 0 : i32
    return %c0_i32, %c0_i32_0 : i32, i32
  }
  func.func @transform_16(%arg0: i32, %arg1: i32, %arg2: i32) -> (i32, i32) {
    %c0_i32 = arith.constant 0 : i32
    %c0_i32_0 = arith.constant 0 : i32
    %c0_i32_1 = arith.constant 0 : i32
    return %c0_i32, %c0_i32_0 : i32, i32
  }
  func.func @transform_17(%arg0: i32, %arg1: i32, %arg2: i32) -> (i32, i32) {
    %c0_i32 = arith.constant 0 : i32
    %c0_i32_0 = arith.constant 0 : i32
    %c0_i32_1 = arith.constant 0 : i32
    return %c0_i32, %c0_i32_0 : i32, i32
  }
  func.func @transform_18(%arg0: i32, %arg1: i32, %arg2: i32) -> (i32, i32, i32) {
    %c0_i32 = arith.constant 0 : i32
    %c0_i32_0 = arith.constant 0 : i32
    return %arg0, %arg1, %c0_i32 : i32, i32, i32
  }
}

</mosaic_0001>

<bundles_post_ra>
// kernel: bert_encoder_forward.2
= control target key start
LH: loop header
LB: loop body
LE: loop exit
PB: predicated region body
PF: predicated region fallthrough
CT: control target
= control target key end

     0   :  { %s2354_s27 = smov 0   ;;  %s2356_s28 = smov 0   ;;  %s2597_s0 = inlined_call_operand.vmem [shape: f32[2,8,32], index: 0, kind: input, shape index: {}]   ;;  %s2598_s1 = inlined_call_operand.vmem [shape: bf16[2,8,32], index: 1, kind: input, shape index: {}]   ;;  %s2599_s2 = inlined_call_operand.vmem [shape: bf16[32,32], index: 2, kind: input, shape index: {}]   ;;  %s2600_s3 = inlined_call_operand.vmem [shape: f32[1,32], index: 3, kind: input, shape index: {}]   ;;  %s2601_s4 = inlined_call_operand.vmem [shape: bf16[32,32], index: 4, kind: input, shape index: {}]   ;;  %s2602_s5 = inlined_call_operand.vmem [shape: f32[1,32], index: 5, kind: input, shape index: {}]   ;;  %s2603_s6 = inlined_call_operand.vmem [shape: bf16[32,32], index: 6, kind: input, shape index: {}]   ;;  %s2604_s7 = inlined_call_operand.vmem [shape: f32[1,32], index: 7, kind: input, shape index: {}]   ;;  %s2605_s8 = inlined_call_operand.vmem [shape: bf16[32,32], index: 8, kind: input, shape index: {}]   ;;  %s2606_s9 = inlined_call_operand.vmem [shape: f32[1,32], index: 9, kind: input, shape index: {}]   ;;  %s2607_s10 = inlined_call_operand.vmem [shape: f32[1,32], index: 10, kind: input, shape index: {}]   ;;  %s2608_s11 = inlined_call_operand.vmem [shape: f32[1,32], index: 11, kind: input, shape index: {}]   ;;  %s2609_s12 = inlined_call_operand.vmem [shape: bf16[32,64], index: 12, kind: input, shape index: {}]   ;;  %s2610_s13 = inlined_call_operand.vmem [shape: f32[1,64], index: 13, kind: input, shape index: {}]   ;;  %s2611_s14 = inlined_call_operand.vmem [shape: bf16[64,32], index: 14, kind: input, shape index: {}]   ;;  %s2612_s15 = inlined_call_operand.vmem [shape: f32[1,32], index: 15, kind: input, shape index: {}]   ;;  %s2613_s16 = inlined_call_operand.vmem [shape: f32[1,32], index: 16, kind: input, shape index: {}]   ;;  %s2614_s17 = inlined_call_operand.vmem [shape: f32[1,32], index: 17, kind: input, shape index: {}]   ;;  %s2615_s18 = inlined_call_operand.vmem [shape: f32[2,8,32], index: 18, kind: output, shape index: {}]  }
   0x1   :  { %2617 = sst [smem:[#allocation8_spill]] %s2597_s0  ;;  %s2358_s29 = smov 0  }
   0x2   :  { %2618 = sst [smem:[#allocation9_spill]] %s2598_s1 }
   0x3   :  { %2619 = sst [smem:[#allocation10_spill]] %s2599_s2 }
   0x4 LB: > { %s47_s30 = sadd.s32 1, %s2248_s28  ;;  %p1947_p0 = scmp.ge.s32.totalorder %s2252_s29, 1  ;;  %s2252_s29 = sphi %s2358_s29, %s28_s29   ;;  %s2248_s28 = sphi %s2356_s28, %s2624_s28   ;;  %s2244_s27 = sphi %s2354_s27, %s2623_s27  }
   0x5   : > { %p49_p1 = scmp.ge.s32.totalorder %s47_s30, 2  ;;  %p574_p2 = scmp.lt.s32.totalorder %s2252_s29, 3 }
   0x7   : > { %s2626_s30 = smov (%p49_p1, %s47_s30), 0  ;;  %p575_p3 = pnand %p1947_p0, %p574_p2 }
   0x8   : > { %s2620_s21 = sld [smem:[#allocation10_spill]] (!%p575_p3)  ;;  %p648_p4 = scmp.lt.s32.totalorder (!%p575_p3), %s2244_s27, 1 }
   0x9   : > { %578 = sbr.rel (%p575_p3) target bundleno = 3529 (0xdc9), region = 92  ;;  %s2621_s1 = sld [smem:[#allocation9_spill]] (!%p575_p3) }
   0xa   : > { %s2622_s23 = sld [smem:[#allocation8_spill]] (!%p575_p3)  ;;  %s2257_s19 = smov (!%p575_p3), 112  }
   0xe   : > { %v2187_v0 = vld [vmem:[%s2601_s4 + $0x8] sm:$0xff]   ;;  %v2254_v1 = vmov 0.0   ;;  %v2189_v3 = vld [vmem:[%s2601_s4] sm:$0xff]   ;;  %vm2255_vm0 = vmmov 0   ;;  %vm710_vm1 = vcmask 261120   ;;  %s2628_s27 = smov (!%p648_p4, %s2244_s27), 1 }
   0xf   : > { %2042 = vmatprep.subr.bf16.mxu1 %v2254_v1  ;;  %2058 = vmatprep.subr.bf16.mxu0 %v2254_v1  ;;  %v2188_v2 = vld [vmem:[%s2620_s21 + $0x8] sm:$0xff]   ;;  %v2190_v4 = vld [vmem:[%s2620_s21] sm:$0xff]   ;;  %1609 = vst.msk [vmem:[#allocation7] sm:$0xff] %vm710_vm1, %v2254_v1  ;;  %s1948_s25 = sshll.u32 %s2628_s27, 3  ;;  %s1949_s26 = sshll.u32 %s2628_s27, 2  ;;  %vm818_vm2 = vcmask 257024  }
  0x10   : > { %2043 = vmatpush3.bf16.msra.mxu1 %v2187_v0  ;;  %2046 = vmatprep.mubr.msk.bf16.mxu1 %vm2255_vm0, %v2254_v1  ;;  %s658_s20 = scalar_lea.vmem %s2621_s1, %s1949_s26  ;;  %s654_s24 = scalar_lea.vmem %s2622_s23, %s1948_s25  ;;  %v2191_v8 = vld [vmem:[%s2603_s6 + $0x8] sm:$0xff]   ;;  %v2192_v9 = vld [vmem:[%s2603_s6] sm:$0xff]   ;;  %vm901_vm3 = vcmask 64512   ;;  %vm963_vm4 = vcmask 1043456   ;;  %vm1717_vm5 = vcmask 523264  }
  0x11   : > { %2059 = vmatpush3.bf16.msra.mxu0 %v2188_v2  ;;  %2044 = vmatprep.subr.bf16.mxu1 %v2254_v1  ;;  %v686_v5 = vld [vmem:[%s658_s20] sm:$0xf]  ;;  %s2258_s23 = smov 104   ;;  %s678_s20 = scalar_lea.vmem %s2615_s18, %s1948_s25 }
  0x12   : > { %2060 = vmatprep.subr.bf16.mxu0 %v2254_v1  ;;  %2062 = vmatprep.mubr.msk.bf16.mxu0 %vm2255_vm0, %v2254_v1  ;;  %v2409_v6 = vld [vmem:[%s654_s24] sm:$0xff]  ;;  %s2256_s24 = smov 120  }
  0x13   : > { %v826_v7 = vpack.c.bf16 %v2409_v6, %v2409_v6  ;;  %v1951_v10 = vld [vmem:[%s2602_s5] ss:$0 sm:$0xff] }
  0x14   : > { %2045 = vmatpush3.bf16.msra.mxu1 %v2189_v3  ;;  %v1959_v13 = vld [vmem:[%s2600_s3] ss:$0 sm:$0xff] }
  0x15   : > { %2061 = vmatpush3.bf16.msra.mxu0 %v2190_v4  ;;  %2050 = vmatprep.subr.bf16.mxu1 %v2254_v1  ;;  %v1955_v30 = vld [vmem:[%s2604_s7] ss:$0 sm:$0xff] }
  0x16   : > { %2072 = vmatprep.subr.bf16.mxu0 %v2254_v1 }
  0x17   : > { %2047 = vmatmul.mubr.msk.bf16.vlgmr.msra.gmra.mxu1 %vm710_vm1, %v686_v5 }
  0x18   : > { %2054 = vmatprep.mubr.msk.bf16.mxu1 %vm2255_vm0, %v2254_v1  ;;  %2063 = vmatmul.mubr.msk.bf16.vlgmr.msra.gmra.mxu0 %vm710_vm1, %v826_v7 }
  0x19   : > { %2074 = vmatprep.mubr.msk.bf16.mxu0 %vm2255_vm0, %v2254_v1  ;;  %2051 = vmatpush3.bf16.msra.mxu1 %v2191_v8  ;;  %v1132_v8 = vld [vmem:[%s2605_s8 + $0x4] sm:$0xf] }
  0x1a   : > { %2052 = vmatprep.subr.bf16.mxu1 %v2254_v1 }
  0x1d   : > { %2053 = vmatpush3.bf16.msra.mxu1 %v2192_v9  ;;  %v1137_v9 = vsel %vm963_vm4, %v1132_v8, 0 }
  0x1e   : > { %2066 = vmatprep.subr.bf16.mxu1 %v2254_v1 }
  0x20   : > { %2055 = vmatmul.mubr.msk.bf16.vlgmr.msra.gmra.mxu1 %vm710_vm1, %v686_v5 }
  0x21   : > { %2068 = vmatprep.mubr.msk.bf16.mxu1 %vm2255_vm0, %v2254_v1 }
  0xd7   : > { %v748_v11 = vpop.f32.mrf.mxu1 }
  0xd8   : > { %v749_v12 = vadd.f32 %v1951_v10, %v748_v11  ;;  %v888_v16 = vpop.f32.mrf.mxu0 }
  0xd9   : > { %v2048_v14 = vpop.f32.mrf.mxu1  ;;  %v889_v17 = vadd.f32 %v1959_v13, %v888_v16 }
  0xda   : > { %v817_v15 = vpack.c.bf16 %v749_v12, %v749_v12  ;;  %v2064_v19 = vpop.f32.mrf.mxu0  ;;  %v1008_v14 = vld [vmem:[%s2605_s8] sm:$0xf] }
  0xdb   : > { %v751_v18 = vpop.f32.mrf.mxu1  ;;  %v894_v20 = vmul.f32 0.35355338, %v889_v17  ;;  %v1183_v17 = vsel %vm963_vm4, %v1008_v14, 0 }
  0xdc   : > { %819 = vst.msk [vmem:[#allocation2] sm:$0xf] %vm818_vm2, %v817_v15  ;;  %v891_v22 = vpop.f32.mrf.mxu0 }
  0xdd   : > { %v2049_v21 = vpop.f32.mrf.mxu1  ;;  %v895_v23 = vpack.c.bf16 %v894_v20, %v894_v20 }
  0xde   : > { %v2065_v24 = vpop.f32.mrf.mxu0 }
  0xdf   : > { %897 = vst.msk [vmem:[#allocation4] sm:$0xf] %vm818_vm2, %v895_v23 }
  0xe0   : > { %v811_v31 = vpop.f32.mrf.mxu1 }
  0xe1   : > { %v812_v32 = vadd.f32 %v1955_v30, %v811_v31 }
  0xe2   : > { %v2056_v33 = vpop.f32.mrf.mxu1 }
  0xe3   : > { %v899_v25 = vld [vmem:[#allocation2] sm:$0xf]  ;;  %v820_v34 = vpack.c.bf16 %v812_v32, %v812_v32 }
  0xe4   : > { %v2193_v26 = vld [vmem:[#allocation2] ss:$0 sps:$4 sm:$0xff]   ;;  %v906_v27 = vsel %vm901_vm3, %v899_v25, 0  ;;  %v814_v35 = vpop.f32.mrf.mxu1 }
  0xe5   : > { %2067 = vmatpush3.bf16.xpose.msra.mxu1 %v906_v27  ;;  %1020 = vrot.lane.b32.xlu0 %v2193_v26, %s2256_s24  ;;  %821 = vst.msk [vmem:[#allocation3] sm:$0xf] %vm818_vm2, %v820_v34  ;;  %v2197_v0 = vld [vmem:[#allocation2] ss:$0 sps:$4 sm:$0xff]  }
  0xe6   : > { %2078 = vmatprep.subr.bf16.mxu1 %v2254_v1  ;;  %v2194_v28 = vld [vmem:[#allocation4] ss:$0 sps:$4 sm:$0xff]   ;;  %v2057_v36 = vpop.f32.mrf.mxu1 }
  0xe7   : > { %v898_v29 = vld [vmem:[#allocation4] sm:$0xf] }
  0xe8   : > { %v2198_v3 = vld [vmem:[#allocation4] ss:$0 sps:$4 sm:$0xff]  }
  0xe9   : > { %1015 = vrot.lane.b32.xlu0 %v2194_v28, %s2256_s24 }
  0xec   : > { %2069 = vmatmul.mubr.msk.bf16.vlgmr.msra.gmra.mxu1 %vm901_vm3, %v898_v29  ;;  %v900_v37 = vld [vmem:[#allocation3] sm:$0xf] }
  0xed   : > { %2080 = vmatprep.mubr.msk.bf16.mxu1 %vm2255_vm0, %v2254_v1  ;;  %v965_v38 = vsel %vm963_vm4, %v900_v37, 0  ;;  %v2195_v57 = vld [vmem:[#allocation3] ss:$0 sps:$4 sm:$0xff]  }
  0xee   : > { %2073 = vmatpush3.bf16.msra.mxu0 %v965_v38  ;;  %v2196_v63 = vld [vmem:[#allocation3] ss:$0 sps:$4 sm:$0xff]  }
  0xef   : > { %2084 = vmatprep.subr.bf16.mxu0 %v2254_v1 }
 0x157   : > { %v1021_v39 = vpop.permute.xlu0 %1020 }
 0x158   : > { %v1026_v40 = vsel %vm901_vm3, %v1021_v39, 0 }
 0x159   : > { %2079 = vmatpush3.bf16.xpose.msra.mxu1 %v1026_v40 }
 0x15a   : > { %2090 = vmatprep.subr.bf16.mxu1 %v2254_v1 }
 0x15b   : > { %v1016_v41 = vpop.permute.xlu0 %1015 }
 0x160   : > { %2081 = vmatmul.mubr.msk.bf16.vlgmr.msra.gmra.mxu1 %vm901_vm3, %v1016_v41 }
 0x161   : > { %2092 = vmatprep.mubr.msk.bf16.mxu1 %vm2255_vm0, %v2254_v1  ;;  %2091 = vmatpush3.bf16.msra.mxu1 %v1137_v9 }
 0x162   : > { %2102 = vmatprep.subr.bf16.mxu1 %v2254_v1 }
 0x1ac   : > { %v942_v42 = vpop.f32.mrf.mxu1 }
 0x1ad   : > { %v948_v43 = vsel %vm901_vm3, %v942_v42, -inf }
 0x1ae   : > { %949 = vmax.xlane.f32.xlu1 %v948_v43  ;;  %v2070_v44 = vpop.f32.mrf.mxu1 }
 0x1b0   : > { %v945_v45 = vpop.f32.mrf.mxu1 }
 0x1b2   : > { %v2071_v46 = vpop.f32.mrf.mxu1 }
 0x220   : > { %v1062_v47 = vpop.f32.mrf.mxu1 }
 0x221   : > { %v1068_v48 = vsel %vm901_vm3, %v1062_v47, -inf }
 0x222   : > { %1069 = vmax.xlane.f32.xlu1 %v1068_v48  ;;  %v2082_v49 = vpop.f32.mrf.mxu1 }
 0x224   : > { %v1065_v50 = vpop.f32.mrf.mxu1 }
 0x226   : > { %v2083_v51 = vpop.f32.mrf.mxu1 }
 0x227   : > { %v2199_v51 = vld [vmem:[#allocation2] ss:$0 sps:$4 sm:$0xff]  }
 0x237   : > { %v950_v52 = vpop.xlane.xlu1 %949 }
 0x238   : > { %v951_v53 = vsub.f32 %v942_v42, %v950_v52  ;;  %v2200_v52 = vld [vmem:[#allocation4] ss:$0 sps:$4 sm:$0xff]  }
 0x23a   : > { %v952_v54 = vmul.f32 1.442695, %v951_v53 }
 0x23c   : > { %2208 = vpow2.f32 %v952_v54 }
 0x249   : > { %v2209_v55 = vpop.eup %2208 }
 0x24a   : > { %v954_v56 = vsel %vm901_vm3, %v2209_v55, 0.0 }
 0x24b   : > { %955 = vadd.xlane.f32.xlu0 %v954_v56 }
 0x261   : > { %1299 = vrot.lane.b32.xlu0 %v2195_v57, %s2257_s19 }
 0x2ab   : > { %v1070_v58 = vpop.xlane.xlu1 %1069 }
 0x2ac   : > { %v1071_v59 = vsub.f32 %v1062_v47, %v1070_v58 }
 0x2ae   : > { %v1072_v60 = vmul.f32 1.442695, %v1071_v59 }
 0x2b0   : > { %2210 = vpow2.f32 %v1072_v60  ;;  %v1348_v60 = vld [vmem:[%s2605_s8 + $0x8] sm:$0xf] }
 0x2bd   : > { %v2211_v61 = vpop.eup %2210 }
 0x2be   : > { %v1074_v62 = vsel %vm901_vm3, %v2211_v61, 0.0 }
 0x2bf   : > { %1075 = vadd.xlane.f32.xlu1 %v1074_v62 }
 0x2d0   : > { %1083 = vrot.lane.b32.xlu1 %v2196_v63, %s2256_s24 }
 0x2d4   : > { %v956_v2 = vpop.xlane.xlu0 %955  ;;  %1236 = vrot.lane.b32.xlu1 %v2197_v0, %s2257_s19 }
 0x2d5   : > { %2212 = vrcp.f32 %v956_v2 }
 0x2d8   : > { %1231 = vrot.lane.b32.xlu1 %v2198_v3, %s2257_s19  ;;  %v1300_v18 = vpop.permute.xlu0 %1299 }
 0x2d9   : > { %v1305_v22 = vsel %vm963_vm4, %v1300_v18, 0  ;;  %v1519_v18 = vld [vmem:[%s2605_s8 + $0xc] sm:$0xf] }
 0x2e2   : > { %v2213_v4 = vpop.eup %2212 }
 0x2e3   : > { %v958_v5 = vmul.f32 %v2213_v4, %v2209_v55 }
 0x2e5   : > { %v959_v7 = vpack.c.bf16 %v958_v5, %v958_v5 }
 0x2e7   : > { %2075 = vmatmul.mubr.msk.bf16.vlgmr.msra.gmra.mxu0 %vm901_vm3, %v959_v7 }
 0x2e8   : > { %2086 = vmatprep.mubr.msk.bf16.mxu0 %vm2255_vm0, %v2254_v1 }
 0x348   : > { %v1076_v10 = vpop.xlane.xlu1 %1075 }
 0x349   : > { %2214 = vrcp.f32 %v1076_v10 }
 0x34c   : > { %v1084_v11 = vpop.permute.xlu1 %1083 }
 0x34d   : > { %v1089_v12 = vsel %vm963_vm4, %v1084_v11, 0 }
 0x34e   : > { %2085 = vmatpush3.bf16.msra.mxu0 %v1089_v12 }
 0x34f   : > { %2096 = vmatprep.subr.bf16.mxu0 %v2254_v1 }
 0x350   : > { %v1237_v25 = vpop.permute.xlu1 %1236 }
 0x351   : > { %v1242_v29 = vsel %vm901_vm3, %v1237_v25, 0 }
 0x354   : > { %v1232_v32 = vpop.permute.xlu1 %1231 }
 0x356   : > { %v2215_v13 = vpop.eup %2214 }
 0x357   : > { %v1078_v15 = vmul.f32 %v2215_v13, %v2211_v61  ;;  %v1353_v61 = vsel %vm963_vm4, %v1348_v60, 0 }
 0x359   : > { %v1079_v16 = vpack.c.bf16 %v1078_v15, %v1078_v15  ;;  %v2201_v15 = vld [vmem:[#allocation3] ss:$0 sps:$4 sm:$0xff]  }
 0x35b   : > { %2087 = vmatmul.mubr.msk.bf16.vlgmr.msra.gmra.mxu0 %vm901_vm3, %v1079_v16 }
 0x35c   : > { %2097 = vmatpush3.bf16.msra.mxu0 %v1183_v17  ;;  %2098 = vmatprep.mubr.msk.bf16.mxu0 %vm2255_vm0, %v2254_v1 }
 0x35d   : > { %2108 = vmatprep.subr.bf16.mxu0 %v2254_v1 }
 0x3a7   : > { %v1001_v19 = vpop.f32.mrf.mxu0 }
 0x3a8   : > { %v1007_v20 = vpack.c.bf16 %v1001_v19, %v1001_v19 }
 0x3a9   : > { %v2076_v21 = vpop.f32.mrf.mxu0 }
 0x3aa   : > { %2099 = vmatmul.mubr.msk.bf16.vlgmr.msra.gmra.mxu0 %vm901_vm3, %v1007_v20  ;;  %v1524_v20 = vsel %vm963_vm4, %v1519_v18, 0 }
 0x3ab   : > { %2109 = vmatpush3.bf16.msra.mxu0 %v1305_v22  ;;  %v1004_v23 = vpop.f32.mrf.mxu0  ;;  %2110 = vmatprep.mubr.msk.bf16.mxu0 %vm2255_vm0, %v2254_v1 }
 0x3ac   : > { %2120 = vmatprep.subr.bf16.mxu0 %v2254_v1 }
 0x3ad   : > { %v2077_v24 = vpop.f32.mrf.mxu0 }
 0x41b   : > { %v1125_v26 = vpop.f32.mrf.mxu0 }
 0x41c   : > { %v1131_v27 = vpack.c.bf16 %v1125_v26, %v1125_v26 }
 0x41d   : > { %v2088_v28 = vpop.f32.mrf.mxu0 }
 0x41e   : > { %2093 = vmatmul.mubr.msk.bf16.vlgmr.msra.gmra.mxu1 %vm901_vm3, %v1131_v27 }
 0x41f   : > { %2103 = vmatpush3.bf16.xpose.msra.mxu1 %v1242_v29  ;;  %v1128_v30 = vpop.f32.mrf.mxu0  ;;  %2104 = vmatprep.mubr.msk.bf16.mxu1 %vm2255_vm0, %v2254_v1 }
 0x420   : > { %2114 = vmatprep.subr.bf16.mxu1 %v2254_v1 }
 0x421   : > { %v2089_v31 = vpop.f32.mrf.mxu0 }
 0x426   : > { %2105 = vmatmul.mubr.msk.bf16.vlgmr.msra.gmra.mxu1 %vm901_vm3, %v1232_v32 }
 0x427   : > { %2116 = vmatprep.mubr.msk.bf16.mxu1 %vm2255_vm0, %v2254_v1  ;;  %2115 = vmatpush3.bf16.msra.mxu1 %v1353_v61  ;;  %v2204_v61 = vld [vmem:[%s2611_s14 + $0x18] sm:$0xff]  }
 0x428   : > { %2126 = vmatprep.subr.bf16.mxu1 %v2254_v1 }
 0x46a   : > { %v2491_v33 = vpop.f32.mrf.mxu0 }
 0x46c   : > { %v2100_v34 = vpop.f32.mrf.mxu0 }
 0x46e   : > { %v1222_v35 = vpop.f32.mrf.mxu0 }
 0x470   : > { %v2101_v36 = vpop.f32.mrf.mxu0 }
 0x471   : > { %v1984_v36 = vld [vmem:[%s2606_s9] ss:$0 sm:$0xff] }
 0x4de   : > { %v1173_v37 = vpop.f32.mrf.mxu1 }
 0x4df   : > { %v1220_v16 = vadd.f32 %v2491_v33, %v1173_v37 }
 0x4e0   : > { %v2094_v38 = vpop.f32.mrf.mxu1 }
 0x4e2   : > { %v1176_v39 = vpop.f32.mrf.mxu1 }
 0x4e4   : > { %v2095_v40 = vpop.f32.mrf.mxu1 }
 0x4e6   : > { %v1278_v41 = vpop.f32.mrf.mxu1 }
 0x4e7   : > { %v1284_v42 = vsel %vm901_vm3, %v1278_v41, -inf }
 0x4e8   : > { %1285 = vmax.xlane.f32.xlu1 %v1284_v42  ;;  %v2106_v43 = vpop.f32.mrf.mxu1 }
 0x4ea   : > { %v1281_v44 = vpop.f32.mrf.mxu1 }
 0x4ec   : > { %v2107_v45 = vpop.f32.mrf.mxu1 }
 0x571   : > { %v1286_v46 = vpop.xlane.xlu1 %1285 }
 0x572   : > { %v1287_v47 = vsub.f32 %v1278_v41, %v1286_v46 }
 0x574   : > { %v1288_v48 = vmul.f32 1.442695, %v1287_v47 }
 0x576   : > { %2216 = vpow2.f32 %v1288_v48 }
 0x583   : > { %v2217_v49 = vpop.eup %2216 }
 0x584   : > { %v1290_v50 = vsel %vm901_vm3, %v2217_v49, 0.0 }
 0x585   : > { %1291 = vadd.xlane.f32.xlu0 %v1290_v50 }
 0x59b   : > { %1407 = vrot.lane.b32.xlu0 %v2199_v51, %s2258_s23 }
 0x59f   : > { %1402 = vrot.lane.b32.xlu0 %v2200_v52, %s2258_s23 }
 0x60e   : > { %v1292_v53 = vpop.xlane.xlu0 %1291 }
 0x60f   : > { %2218 = vrcp.f32 %v1292_v53 }
 0x612   : > { %v1408_v56 = vpop.permute.xlu0 %1407 }
 0x613   : > { %v1413_v58 = vsel %vm901_vm3, %v1408_v56, 0  ;;  %v1986_v56 = vld [vmem:[%s2608_s11] ss:$0 sm:$0xff] }
 0x616   : > { %v1403_v59 = vpop.permute.xlu0 %1402 }
 0x61c   : > { %v2219_v54 = vpop.eup %2218 }
 0x61d   : > { %v1294_v55 = vmul.f32 %v2219_v54, %v2217_v49  ;;  %v2202_v49 = vld [vmem:[%s2609_s12 + $0x8] sm:$0xff]   ;;  %v1985_v54 = vld [vmem:[%s2607_s10] ss:$0 sm:$0xff] }
 0x61f   : > { %v1295_v57 = vpack.c.bf16 %v1294_v55, %v1294_v55 }
 0x621   : > { %2111 = vmatmul.mubr.msk.bf16.vlgmr.msra.gmra.mxu0 %vm901_vm3, %v1295_v57 }
 0x622   : > { %2121 = vmatpush3.bf16.xpose.msra.mxu0 %v1413_v58  ;;  %2122 = vmatprep.mubr.msk.bf16.mxu0 %vm2255_vm0, %v2254_v1 }
 0x623   : > { %2132 = vmatprep.subr.bf16.mxu0 %v2254_v1 }
 0x629   : > { %2123 = vmatmul.mubr.msk.bf16.vlgmr.msra.gmra.mxu0 %vm901_vm3, %v1403_v59 }
 0x62a   : > { %2134 = vmatprep.mubr.msk.bf16.mxu0 %vm2255_vm0, %v2254_v1  ;;  %2133 = vmatpush3.bf16.msra.mxu0 %v1524_v20  ;;  %v1996_v20 = vld [vmem:[%s2612_s15] ss:$0 sm:$0xff] }
 0x62b   : > { %2146 = vmatprep.subr.bf16.mxu0 %v2254_v1 }
 0x6e1   : > { %v1341_v62 = vpop.f32.mrf.mxu0 }
 0x6e2   : > { %v1347_v63 = vpack.c.bf16 %v1341_v62, %v1341_v62  ;;  %v2205_v62 = vld [vmem:[%s2611_s14 + $0x10] sm:$0xff]  }
 0x6e3   : > { %v2112_v0 = vpop.f32.mrf.mxu0 }
 0x6e4   : > { %2117 = vmatmul.mubr.msk.bf16.vlgmr.msra.gmra.mxu1 %vm901_vm3, %v1347_v63  ;;  %v2206_v63 = vld [vmem:[%s2611_s14 + $0x8] sm:$0xff]   ;;  %v2207_v0 = vld [vmem:[%s2611_s14] sm:$0xff]  }
 0x6e5   : > { %v1344_v2 = vpop.f32.mrf.mxu0  ;;  %2128 = vmatprep.mubr.msk.bf16.mxu1 %vm2255_vm0, %v2254_v1 }
 0x6e6   : > { %v1987_v2 = vld [vmem:[%s2610_s13] ss:$0 sm:$0xff] }
 0x6e7   : > { %v2113_v3 = vpop.f32.mrf.mxu0 }
 0x6e9   : > { %v1449_v4 = vpop.f32.mrf.mxu0 }
 0x6ea   : > { %v1455_v5 = vsel %vm901_vm3, %v1449_v4, -inf }
 0x6eb   : > { %1456 = vmax.xlane.f32.xlu0 %v1455_v5  ;;  %v2124_v7 = vpop.f32.mrf.mxu0 }
 0x6ed   : > { %v1452_v8 = vpop.f32.mrf.mxu0 }
 0x6ef   : > { %v2125_v9 = vpop.f32.mrf.mxu0 }
 0x774   : > { %v1457_v10 = vpop.xlane.xlu0 %1456 }
 0x775   : > { %v1458_v11 = vsub.f32 %v1449_v4, %v1457_v10 }
 0x777   : > { %v1459_v12 = vmul.f32 1.442695, %v1458_v11 }
 0x779   : > { %2220 = vpow2.f32 %v1459_v12 }
 0x786   : > { %v2221_v13 = vpop.eup %2220 }
 0x787   : > { %v1461_v14 = vsel %vm901_vm3, %v2221_v13, 0.0 }
 0x788   : > { %1462 = vadd.xlane.f32.xlu1 %v1461_v14  ;;  %v1683_v14 = vld [vmem:[#allocation7] sm:$0xff] }
 0x799   : > { %1470 = vrot.lane.b32.xlu1 %v2201_v15, %s2258_s23 }
 0x7a4   : > { %v1389_v17 = vpop.f32.mrf.mxu1 }
 0x7a5   : > { %v1395_v19 = vadd.f32 %v1389_v17, %v1220_v16 }
 0x7a6   : > { %v2118_v21 = vpop.f32.mrf.mxu1 }
 0x7a8   : > { %v1392_v22 = vpop.f32.mrf.mxu1 }
 0x7aa   : > { %v2119_v23 = vpop.f32.mrf.mxu1 }
 0x811   : > { %v1463_v24 = vpop.xlane.xlu1 %1462 }
 0x812   : > { %2222 = vrcp.f32 %v1463_v24 }
 0x815   : > { %v1471_v25 = vpop.permute.xlu1 %1470 }
 0x816   : > { %v1476_v26 = vsel %vm963_vm4, %v1471_v25, 0 }
 0x817   : > { %2127 = vmatpush3.bf16.msra.mxu1 %v1476_v26 }
 0x818   : > { %2138 = vmatprep.subr.bf16.mxu1 %v2254_v1 }
 0x81f   : > { %v2223_v27 = vpop.eup %2222 }
 0x820   : > { %v1465_v28 = vmul.f32 %v2223_v27, %v2221_v13 }
 0x822   : > { %v1466_v29 = vpack.c.bf16 %v1465_v28, %v1465_v28 }
 0x824   : > { %2129 = vmatmul.mubr.msk.bf16.vlgmr.msra.gmra.mxu1 %vm901_vm3, %v1466_v29 }
 0x825   : > { %2142 = vmatprep.mubr.msk.bf16.mxu1 %vm2255_vm0, %v2254_v1  ;;  %2139 = vmatpush3.bf16.msra.mxu1 %v2202_v49 }
 0x826   : > { %2140 = vmatprep.subr.bf16.mxu1 %v2254_v1 }
 0x8e4   : > { %v1512_v30 = vpop.f32.mrf.mxu1 }
 0x8e5   : > { %v1518_v31 = vpack.c.bf16 %v1512_v30, %v1512_v30 }
 0x8e6   : > { %v2130_v32 = vpop.f32.mrf.mxu1 }
 0x8e7   : > { %2135 = vmatmul.mubr.msk.bf16.vlgmr.msra.gmra.mxu0 %vm901_vm3, %v1518_v31 }
 0x8e8   : > { %v1515_v33 = vpop.f32.mrf.mxu1  ;;  %2154 = vmatprep.mubr.msk.bf16.mxu0 %vm2255_vm0, %v2254_v1  ;;  %2147 = vmatpush3.bf16.msra.mxu0 %v2204_v61 }
 0x8e9   : > { %2148 = vmatprep.subr.bf16.mxu0 %v2254_v1 }
 0x8ea   : > { %v2131_v34 = vpop.f32.mrf.mxu1 }
 0x8ec   : > { %2149 = vmatpush3.bf16.msra.mxu0 %v2205_v62 }
 0x8ed   : > { %2150 = vmatprep.subr.bf16.mxu0 %v2254_v1 }
 0x8f0   : > { %2151 = vmatpush3.bf16.msra.mxu0 %v2206_v63 }
 0x8f1   : > { %2152 = vmatprep.subr.bf16.mxu0 %v2254_v1 }
 0x8f4   : > { %2153 = vmatpush3.bf16.msra.mxu0 %v2207_v0 }
 0x9a7   : > { %v1560_v35 = vpop.f32.mrf.mxu0 }
 0x9a8   : > { %v1566_v37 = vadd.f32 %v1560_v35, %v1395_v19  ;;  %v1997_v35 = vld [vmem:[%s2613_s16] ss:$0 sm:$0xff] }
 0x9a9   : > { %v2136_v38 = vpop.f32.mrf.mxu0 }
 0x9aa   : > { %v1574_v39 = vadd.f32 %v1984_v36, %v1566_v37  ;;  %v1998_v37 = vld [vmem:[%s2614_s17] ss:$0 sm:$0xff] }
 0x9ab   : > { %v1563_v40 = vpop.f32.mrf.mxu0 }
 0x9ac   : > { %v1575_v41 = vadd.f32 %v1574_v39, %v2409_v6  ;;  %v2203_v6 = vld [vmem:[%s2609_s12] sm:$0xff]  }
 0x9ad   : > { %v2137_v42 = vpop.f32.mrf.mxu0  ;;  %2141 = vmatpush3.bf16.msra.mxu1 %v2203_v6 }
 0x9ae   : > { %v1578_v43 = vsel %vm710_vm1, %v1575_v41, 0.0 }
 0x9af   : > { %1579 = vadd.xlane.f32.xlu1 %v1578_v43 }
 0xa38   : > { %v1580_v44 = vpop.xlane.xlu1 %1579 }
 0xa39   : > { %v1582_v45 = vmul.f32 0.03125, %v1580_v44 }
 0xa3b   : > { %v1583_v46 = vsub.f32 %v1575_v41, %v1582_v45 }
 0xa3d   : > { %v1584_v47 = vmul.f32 %v1583_v46, %v1583_v46 }
 0xa3f   : > { %v1585_v48 = vsel %vm710_vm1, %v1584_v47, 0.0 }
 0xa40   : > { %1586 = vadd.xlane.f32.xlu0 %v1585_v48 }
 0xac9   : > { %v1587_v50 = vpop.xlane.xlu0 %1586 }
 0xaca   : > { %v1588_v51 = vmul.f32 0.03125, %v1587_v50 }
 0xacc   : > { %v1589_v52 = vadd.f32 1e-12, %v1588_v51 }
 0xace   : > { %2224 = vrsqrt.f32 %v1589_v52 }
 0xadb   : > { %v2225_v53 = vpop.eup %2224 }
 0xadc   : > { %v1591_v55 = vmul.f32 %v2225_v53, %v1583_v46 }
 0xade   : > { %v1598_v57 = vmul.f32 %v1985_v54, %v1591_v55 }
 0xae0   : > { %v1605_v58 = vadd.f32 %v1986_v56, %v1598_v57 }
 0xae2   : > { %1606 = vst.msk [vmem:[#allocation5] sm:$0xff] %vm710_vm1, %v1605_v58  ;;  %v1607_v59 = vpack.c.bf16 %v1605_v58, %v1605_v58 }
 0xae4   : > { %1608 = vst.msk [vmem:[#allocation6] sm:$0xf] %vm818_vm2, %v1607_v59 }
 0xae9   : > { %v1775_v23 = vld [vmem:[#allocation5] sm:$0xff] }
 0xaeb   : > { %v1610_v60 = vld [vmem:[#allocation6] sm:$0xf] }
 0xaec   : > { %2143 = vmatmul.mubr.msk.bf16.vlgmr.msra.gmra.mxu1 %vm710_vm1, %v1610_v60 }
 0xbac   : > { %v1672_v3 = vpop.f32.mrf.mxu1 }
 0xbad   : > { %v1673_v4 = vadd.f32 %v1987_v2, %v1672_v3 }
 0xbae   : > { %v2144_v5 = vpop.f32.mrf.mxu1 }
 0xbaf   : > { %v1679_v7 = vmul.f32 0.70710677, %v1673_v4  ;;  %v1678_v11 = vmul.f32 0.5, %v1673_v4 }
 0xbb0   : > { %v1675_v8 = vpop.f32.mrf.mxu1 }
 0xbb1   : > { %2226 = verf.f32 %v1679_v7 }
 0xbb2   : > { %v2145_v9 = vpop.f32.mrf.mxu1 }
 0xbbe   : > { %v2227_v10 = vpop.eup %2226 }
 0xbbf   : > { %v1681_v12 = vadd.f32 1.0, %v2227_v10 }
 0xbc1   : > { %v1682_v1 = vmul.f32 %v1681_v12, %v1678_v11 }
 0xbc3   : > { %v1684_v13 = vpack.c.bf16 %v1682_v1, %v1682_v1 }
 0xbc5   : > { %2155 = vmatmul.mubr.msk.bf16.vlgmr.msra.gmra.mxu0 %vm1717_vm5, %v1684_v13 }
 0xc85   : > { %v1755_v15 = vpop.f32.mrf.mxu0 }
 0xc86   : > { %v1761_v16 = vadd.f32 %v1755_v15, %v1683_v14 }
 0xc87   : > { %v2156_v17 = vpop.f32.mrf.mxu0 }
 0xc88   : > { %1762 = vst.msk [vmem:[#allocation7] sm:$0xff] %vm710_vm1, %v1761_v16 }
 0xc89   : > { %v1758_v18 = vpop.f32.mrf.mxu0 }
 0xc8b   : > { %v2157_v19 = vpop.f32.mrf.mxu0 }
 0xc8f   : > { %v1766_v21 = vld [vmem:[#allocation7] sm:$0xff] }
 0xc90   : > { %v1774_v22 = vadd.f32 %v1996_v20, %v1766_v21 }
 0xc92   : > { %v1776_v24 = vadd.f32 %v1775_v23, %v1774_v22 }
 0xc94   : > { %v1779_v25 = vsel %vm710_vm1, %v1776_v24, 0.0 }
 0xc95   : > { %1780 = vadd.xlane.f32.xlu0 %v1779_v25 }
 0xd1e   : > { %v1781_v26 = vpop.xlane.xlu0 %1780 }
 0xd1f   : > { %v1783_v27 = vmul.f32 0.03125, %v1781_v26 }
 0xd21   : > { %v1784_v28 = vsub.f32 %v1776_v24, %v1783_v27 }
 0xd23   : > { %v1785_v29 = vmul.f32 %v1784_v28, %v1784_v28 }
 0xd25   : > { %v1786_v30 = vsel %vm710_vm1, %v1785_v29, 0.0 }
 0xd26   : > { %1787 = vadd.xlane.f32.xlu0 %v1786_v30 }
 0xdaf   : > { %v1788_v31 = vpop.xlane.xlu0 %1787 }
 0xdb0   : > { %v1789_v32 = vmul.f32 0.03125, %v1788_v31 }
 0xdb2   : > { %v1790_v33 = vadd.f32 1e-12, %v1789_v32 }
 0xdb4   : > { %2228 = vrsqrt.f32 %v1790_v33 }
 0xdc1   : > { %v2229_v34 = vpop.eup %2228 }
 0xdc2   : > { %v1792_v36 = vmul.f32 %v2229_v34, %v1784_v28 }
 0xdc4   : > { %v1799_v38 = vmul.f32 %v1997_v35, %v1792_v36 }
 0xdc6   : > { %v1806_v39 = vadd.f32 %v1998_v37, %v1799_v38 }
 0xdc8   : > { %1807 = vst.msk [vmem:[%s678_s20] sm:$0xff] %vm710_vm1, %v1806_v39 }
 0xdc9 PF: > { %s28_s29 = sadd.s32 1, %s2252_s29   ;;  %s2623_s27 = smov %s2248_s28 }
 0xdca   : > { %p25_p5 = scmp.ge.s32.totalorder %s28_s29, 4   ;;  %s2624_s28 = smov %s2626_s30 }
 0xdcc   :  { %27 = sbr.rel (!%p25_p5) target bundleno = 4 (0x4), region = 146 }

// kernel: bert_encoder_forward.3
= control target key start
LH: loop header
LB: loop body
LE: loop exit
PB: predicated region body
PF: predicated region fallthrough
CT: control target
= control target key end

     0   :  { %s2748_s0 = inlined_call_operand.vmem [shape: f32[2,8,32], index: 0, kind: input, shape index: {}]   ;;  %s2749_s1 = inlined_call_operand.vmem [shape: bf16[2,8,32], index: 1, kind: input, shape index: {}]   ;;  %s2750_s2 = inlined_call_operand.vmem [shape: bf16[32,32], index: 2, kind: input, shape index: {}]   ;;  %s2751_s3 = inlined_call_operand.vmem [shape: f32[1,32], index: 3, kind: input, shape index: {}]   ;;  %s2752_s4 = inlined_call_operand.vmem [shape: bf16[32,32], index: 4, kind: input, shape index: {}]   ;;  %s2753_s5 = inlined_call_operand.vmem [shape: f32[1,32], index: 5, kind: input, shape index: {}]   ;;  %s2754_s6 = inlined_call_operand.vmem [shape: bf16[32,32], index: 6, kind: input, shape index: {}]   ;;  %s2755_s7 = inlined_call_operand.vmem [shape: f32[1,32], index: 7, kind: input, shape index: {}]   ;;  %s2756_s8 = inlined_call_operand.vmem [shape: bf16[32,32], index: 8, kind: input, shape index: {}]   ;;  %s2757_s9 = inlined_call_operand.vmem [shape: f32[1,32], index: 9, kind: input, shape index: {}]   ;;  %s2758_s10 = inlined_call_operand.vmem [shape: f32[1,32], index: 10, kind: input, shape index: {}]   ;;  %s2759_s11 = inlined_call_operand.vmem [shape: f32[1,32], index: 11, kind: input, shape index: {}]   ;;  %s2760_s12 = inlined_call_operand.vmem [shape: bf16[32,64], index: 12, kind: input, shape index: {}]   ;;  %s2761_s13 = inlined_call_operand.vmem [shape: f32[1,64], index: 13, kind: input, shape index: {}]   ;;  %s2762_s14 = inlined_call_operand.vmem [shape: bf16[64,32], index: 14, kind: input, shape index: {}]   ;;  %s2763_s15 = inlined_call_operand.vmem [shape: f32[1,32], index: 15, kind: input, shape index: {}]   ;;  %s2764_s16 = inlined_call_operand.vmem [shape: f32[1,32], index: 16, kind: input, shape index: {}]   ;;  %s2765_s17 = inlined_call_operand.vmem [shape: f32[1,32], index: 17, kind: input, shape index: {}]   ;;  %s2766_s18 = inlined_call_operand.hbm [shape: f32[2,8,32], index: 18, kind: output, shape index: {}]  }
   0x1   :  { %2773 = sst [smem:[#allocation16_spill]] %s2748_s0 }
   0x2   :  { %2774 = sst [smem:[#allocation17_spill]] %s2749_s1 }
   0x3   :  { %2775 = sst [smem:[#allocation18_spill]] %s2750_s2 }
   0x4   :  { %2776 = sst [smem:[#allocation19_spill]] %s2751_s3 }
   0x5   :  { %2777 = sst [smem:[#allocation20_spill]] %s2752_s4 }
   0x6   :  { %2778 = sst [smem:[#allocation21_spill]] %s2753_s5 }
   0x7   :  { %23 = vsyncpa [#allocation9], 0 }
   0x8   :  { %25 = vsyncpa [#allocation9 + $0x1], 0  ;;  %s2447_s27 = smov 0   ;;  %s2449_s28 = smov 0  }
   0x9   :  { %s2451_s29 = smov 0   ;;  %s2453_s30 = smov 0  }
   0xa   :  { %s2455_s0 = smov 0   ;;  %s2457_s19 = smov 0  }
   0xb LB: > { %2779 = sst [smem:[#allocation11_spill]] %s2332_s29  ;;  %s1945_s1 = sadd.s32 4294967295, %s2344_s19   ;;  %s2344_s19 = sphi %s2457_s19, %s31_s19   ;;  %s2340_s0 = sphi %s2455_s0, %s2796_s0   ;;  %s2336_s30 = sphi %s2453_s30, %s2795_s30   ;;  %s2332_s29 = sphi %s2451_s29, %s2794_s29   ;;  %s2328_s28 = sphi %s2449_s28, %s2798_s28   ;;  %s2324_s27 = sphi %s2447_s27, %s2797_s27  }
   0xc   : > { %2780 = sst [smem:[#allocation12_spill]] %s2340_s0  ;;  %s1946_s20 = sadd.s32 4294967294, %s2344_s19  }
   0xd   : > { %s50_s21 = sadd.s32 1, %s2340_s0  ;;  %s464_s22 = sadd.s32 1, %s2332_s29 }
   0xe   : > { %p52_p0 = scmp.ge.s32.totalorder %s50_s21, 2  ;;  %p474_p1 = scmp.ne.s32.totalorder %s2332_s29, %s2328_s28 }
   0xf   : > { %p475_p2 = scmp.eq.s32.totalorder %s1945_s1, 1  ;;  %p480_p3 = scmp.ne.s32.totalorder %s2328_s28, %s2324_s27 }
  0x10   : > { %s2800_s21 = smov (%p52_p0, %s50_s21), 0  ;;  %p481_p5 = scmp.eq.s32.totalorder %s1946_s20, 1 }
  0x11   : > { %2781 = sst [smem:[#allocation13_spill]] %s2800_s21  ;;  %p2487_p4 = por %p475_p2, %p474_p1 }
  0x12   : > { %s459_s23 = ssub.s32 %s2340_s0, %s2800_s21  ;;  %p1952_p6 = scmp.ge.s32.totalorder %s2344_s19, 1 }
  0x13   : > { %p462_p7 = scmp.eq.s32.totalorder %s459_s23, 0  ;;  %p2494_p8 = por %p481_p5, %p480_p3 }
  0x14   : > { %p577_p9 = scmp.lt.s32.totalorder %s2344_s19, 3 }
  0x15   : > { %s2783_s24 = scalar_select %p2494_p8, 1, 0 }
  0x16   : > { %s2500_s25 = scalar_select %p462_p7, %s2332_s29, %s464_s22  }
  0x17   : > { %2784 = sst [smem:[#allocation14_spill]] %s2783_s24  ;;  %p578_p10 = pnand %p1952_p6, %p577_p9 }
  0x18   : > { %2785 = sst [smem:[#allocation15_spill]] %s2500_s25  ;;  %p649_p11 = scmp.lt.s32.totalorder (!%p578_p10), %s2336_s30, 1 }
  0x19   : > { %581 = sbr.rel (%p578_p10) target bundleno = 3559 (0xde7), region = 92  ;;  %s2786_s4 = sld [smem:[#allocation20_spill]] (!%p578_p10) }
  0x1a   : > { %s2787_s21 = sld [smem:[#allocation18_spill]] (!%p578_p10)  ;;  %s2348_s22 = smov (!%p578_p10), 120  }
  0x1b   : > { %s2788_s25 = sld [smem:[#allocation16_spill]] (!%p578_p10)  ;;  %s646_s1 = sand.u32 (!%p578_p10), 1, %s2328_s28  }
  0x1c   : > { %s2790_s5 = sld [smem:[#allocation21_spill]] (!%p578_p10) }
  0x1d   : > { %s2791_s3 = sld [smem:[#allocation19_spill]] (!%p578_p10) }
  0x1e   : > { %v2346_v1 = vmov 0.0   ;;  %vm2347_vm0 = vmmov 0   ;;  %vm704_vm1 = vcmask 261120   ;;  %s650_s20 = scalar_select %p649_p11, %s2336_s30, 1  ;;  %v2229_v8 = vld [vmem:[%s2754_s6 + $0x8] sm:$0xff]   ;;  %v2230_v9 = vld [vmem:[%s2754_s6] sm:$0xff]  }
  0x1f   : > { %v2225_v0 = vld [vmem:[%s2786_s4 + $0x8] sm:$0xff]   ;;  %2049 = vmatprep.subr.bf16.mxu1 %v2346_v1  ;;  %2065 = vmatprep.subr.bf16.mxu0 %v2346_v1  ;;  %v2227_v3 = vld [vmem:[%s2786_s4] sm:$0xff]   ;;  %1603 = vst.msk [vmem:[#allocation7] sm:$0xff] %vm704_vm1, %v2346_v1  ;;  %vm812_vm2 = vcmask 257024   ;;  %vm895_vm3 = vcmask 64512   ;;  %vm957_vm4 = vcmask 1043456  }
  0x20   : > { %v2226_v2 = vld [vmem:[%s2787_s21 + $0x8] sm:$0xff]   ;;  %2050 = vmatpush3.bf16.msra.mxu1 %v2225_v0  ;;  %2053 = vmatprep.mubr.msk.bf16.mxu1 %vm2347_vm0, %v2346_v1  ;;  %v2228_v4 = vld [vmem:[%s2787_s21] sm:$0xff]   ;;  %s1954_s0 = sshll.u32 %s650_s20, 3  ;;  %s1955_s23 = sshll.u32 %s650_s20, 2  ;;  %vm1711_vm5 = vcmask 523264  }
  0x21   : > { %2066 = vmatpush3.bf16.msra.mxu0 %v2226_v2  ;;  %2051 = vmatprep.subr.bf16.mxu1 %v2346_v1  ;;  %s655_s29 = scalar_lea.vmem %s2788_s25, %s1954_s0  ;;  %s2789_s21 = sld [smem:[#allocation17_spill]]  ;;  %v1960_v30 = vld [vmem:[%s2755_s7] ss:$0 sm:$0xff] }
  0x22   : > { %2067 = vmatprep.subr.bf16.mxu0 %v2346_v1  ;;  %2069 = vmatprep.mubr.msk.bf16.mxu0 %vm2347_vm0, %v2346_v1  ;;  %v2533_v6 = vld [vmem:[%s655_s29] sm:$0xff]  ;;  %s2349_s4 = smov 112   ;;  %s2350_s20 = smov 104  }
  0x23   : > { %v820_v7 = vpack.c.bf16 %v2533_v6, %v2533_v6  ;;  %v1956_v10 = vld [vmem:[%s2790_s5] ss:$0 sm:$0xff]  ;;  %s1803_s5 = scalar_lea.sflag [#allocation9], %s646_s1  ;;  %s2351_s29 = smov [#allocation8]  }
  0x24   : > { %2052 = vmatpush3.bf16.msra.mxu1 %v2227_v3  ;;  %v1964_v12 = vld [vmem:[%s2791_s3] ss:$0 sm:$0xff] }
  0x25   : > { %2068 = vmatpush3.bf16.msra.mxu0 %v2228_v4  ;;  %2057 = vmatprep.subr.bf16.mxu1 %v2346_v1 }
  0x26   : > { %2079 = vmatprep.subr.bf16.mxu0 %v2346_v1 }
  0x27   : > { %s659_s24 = scalar_lea.vmem %s2789_s21, %s1955_s23 }
  0x28   : > { %v680_v5 = vld [vmem:[%s659_s24] sm:$0xf]  ;;  %2070 = vmatmul.mubr.msk.bf16.vlgmr.msra.gmra.mxu0 %vm704_vm1, %v820_v7  ;;  %s2272_s24 = sshll.u32 %s2351_s29, 4  ;;  %s2273_s24 = int_to_ptr.vmem [resolvable:$false] %s2272_s24 }
  0x29   : > { %2054 = vmatmul.mubr.msk.bf16.vlgmr.msra.gmra.mxu1 %vm704_vm1, %v680_v5  ;;  %2081 = vmatprep.mubr.msk.bf16.mxu0 %vm2347_vm0, %v2346_v1 }
  0x2a   : > { %2061 = vmatprep.mubr.msk.bf16.mxu1 %vm2347_vm0, %v2346_v1  ;;  %2058 = vmatpush3.bf16.msra.mxu1 %v2229_v8  ;;  %v1126_v8 = vld [vmem:[%s2756_s8 + $0x4] sm:$0xf] }
  0x2b   : > { %2059 = vmatprep.subr.bf16.mxu1 %v2346_v1 }
  0x2e   : > { %2060 = vmatpush3.bf16.msra.mxu1 %v2230_v9  ;;  %v1131_v9 = vsel %vm957_vm4, %v1126_v8, 0 }
  0x2f   : > { %2073 = vmatprep.subr.bf16.mxu1 %v2346_v1 }
  0x31   : > { %2062 = vmatmul.mubr.msk.bf16.vlgmr.msra.gmra.mxu1 %vm704_vm1, %v680_v5 }
  0x32   : > { %2075 = vmatprep.mubr.msk.bf16.mxu1 %vm2347_vm0, %v2346_v1 }
  0xe8   : > { %v882_v14 = vpop.f32.mrf.mxu0 }
  0xe9   : > { %v742_v11 = vpop.f32.mrf.mxu1  ;;  %v883_v17 = vadd.f32 %v1964_v12, %v882_v14  ;;  %v1002_v14 = vld [vmem:[%s2756_s8] sm:$0xf] }
  0xea   : > { %v743_v13 = vadd.f32 %v1956_v10, %v742_v11  ;;  %v2071_v18 = vpop.f32.mrf.mxu0 }
  0xeb   : > { %v2055_v15 = vpop.f32.mrf.mxu1  ;;  %v888_v20 = vmul.f32 0.35355338, %v883_v17  ;;  %v1177_v17 = vsel %vm957_vm4, %v1002_v14, 0 }
  0xec   : > { %v811_v16 = vpack.c.bf16 %v743_v13, %v743_v13  ;;  %v885_v21 = vpop.f32.mrf.mxu0 }
  0xed   : > { %v745_v19 = vpop.f32.mrf.mxu1  ;;  %v889_v23 = vpack.c.bf16 %v888_v20, %v888_v20 }
  0xee   : > { %813 = vst.msk [vmem:[#allocation2] sm:$0xf] %vm812_vm2, %v811_v16  ;;  %v2072_v24 = vpop.f32.mrf.mxu0 }
  0xef   : > { %v2056_v22 = vpop.f32.mrf.mxu1  ;;  %891 = vst.msk [vmem:[#allocation4] sm:$0xf] %vm812_vm2, %v889_v23 }
  0xf1   : > { %v805_v31 = vpop.f32.mrf.mxu1 }
  0xf2   : > { %v806_v32 = vadd.f32 %v1960_v30, %v805_v31 }
  0xf3   : > { %v2063_v33 = vpop.f32.mrf.mxu1 }
  0xf4   : > { %v814_v34 = vpack.c.bf16 %v806_v32, %v806_v32 }
  0xf5   : > { %v893_v25 = vld [vmem:[#allocation2] sm:$0xf]  ;;  %v808_v35 = vpop.f32.mrf.mxu1 }
  0xf6   : > { %v2231_v26 = vld [vmem:[#allocation2] ss:$0 sps:$4 sm:$0xff]   ;;  %v900_v27 = vsel %vm895_vm3, %v893_v25, 0  ;;  %v2232_v28 = vld [vmem:[#allocation4] ss:$0 sps:$4 sm:$0xff]  }
  0xf7   : > { %2074 = vmatpush3.bf16.xpose.msra.mxu1 %v900_v27  ;;  %1014 = vrot.lane.b32.xlu0 %v2231_v26, %s2348_s22  ;;  %v892_v29 = vld [vmem:[#allocation4] sm:$0xf]  ;;  %815 = vst.msk [vmem:[#allocation3] sm:$0xf] %vm812_vm2, %v814_v34  ;;  %v2064_v36 = vpop.f32.mrf.mxu1  ;;  %v2235_v0 = vld [vmem:[#allocation2] ss:$0 sps:$4 sm:$0xff]  }
  0xf8   : > { %2085 = vmatprep.subr.bf16.mxu1 %v2346_v1  ;;  %v2236_v3 = vld [vmem:[#allocation4] ss:$0 sps:$4 sm:$0xff]  }
  0xfb   : > { %1009 = vrot.lane.b32.xlu0 %v2232_v28, %s2348_s22 }
  0xfe   : > { %2076 = vmatmul.mubr.msk.bf16.vlgmr.msra.gmra.mxu1 %vm895_vm3, %v892_v29  ;;  %v894_v37 = vld [vmem:[#allocation3] sm:$0xf] }
  0xff   : > { %2087 = vmatprep.mubr.msk.bf16.mxu1 %vm2347_vm0, %v2346_v1  ;;  %v959_v38 = vsel %vm957_vm4, %v894_v37, 0  ;;  %v2233_v57 = vld [vmem:[#allocation3] ss:$0 sps:$4 sm:$0xff]  }
 0x100   : > { %2080 = vmatpush3.bf16.msra.mxu0 %v959_v38  ;;  %v2234_v63 = vld [vmem:[#allocation3] ss:$0 sps:$4 sm:$0xff]  }
 0x101   : > { %2091 = vmatprep.subr.bf16.mxu0 %v2346_v1 }
 0x169   : > { %v1015_v39 = vpop.permute.xlu0 %1014 }
 0x16a   : > { %v1020_v40 = vsel %vm895_vm3, %v1015_v39, 0 }
 0x16b   : > { %2086 = vmatpush3.bf16.xpose.msra.mxu1 %v1020_v40 }
 0x16c   : > { %2097 = vmatprep.subr.bf16.mxu1 %v2346_v1 }
 0x16d   : > { %v1010_v41 = vpop.permute.xlu0 %1009 }
 0x172   : > { %2088 = vmatmul.mubr.msk.bf16.vlgmr.msra.gmra.mxu1 %vm895_vm3, %v1010_v41 }
 0x173   : > { %2099 = vmatprep.mubr.msk.bf16.mxu1 %vm2347_vm0, %v2346_v1  ;;  %2098 = vmatpush3.bf16.msra.mxu1 %v1131_v9 }
 0x174   : > { %2109 = vmatprep.subr.bf16.mxu1 %v2346_v1 }
 0x1be   : > { %v936_v42 = vpop.f32.mrf.mxu1 }
 0x1bf   : > { %v942_v43 = vsel %vm895_vm3, %v936_v42, -inf }
 0x1c0   : > { %943 = vmax.xlane.f32.xlu1 %v942_v43  ;;  %v2077_v44 = vpop.f32.mrf.mxu1 }
 0x1c2   : > { %v939_v45 = vpop.f32.mrf.mxu1 }
 0x1c4   : > { %v2078_v46 = vpop.f32.mrf.mxu1 }
 0x232   : > { %v1056_v47 = vpop.f32.mrf.mxu1 }
 0x233   : > { %v1062_v48 = vsel %vm895_vm3, %v1056_v47, -inf }
 0x234   : > { %1063 = vmax.xlane.f32.xlu1 %v1062_v48  ;;  %v2089_v49 = vpop.f32.mrf.mxu1 }
 0x236   : > { %v1059_v50 = vpop.f32.mrf.mxu1 }
 0x238   : > { %v2090_v51 = vpop.f32.mrf.mxu1 }
 0x239   : > { %v2237_v51 = vld [vmem:[#allocation2] ss:$0 sps:$4 sm:$0xff]  }
 0x249   : > { %v944_v52 = vpop.xlane.xlu1 %943 }
 0x24a   : > { %v945_v53 = vsub.f32 %v936_v42, %v944_v52  ;;  %v2238_v52 = vld [vmem:[#allocation4] ss:$0 sps:$4 sm:$0xff]  }
 0x24c   : > { %v946_v54 = vmul.f32 1.442695, %v945_v53 }
 0x24e   : > { %2246 = vpow2.f32 %v946_v54 }
 0x25b   : > { %v2247_v55 = vpop.eup %2246 }
 0x25c   : > { %v948_v56 = vsel %vm895_vm3, %v2247_v55, 0.0 }
 0x25d   : > { %949 = vadd.xlane.f32.xlu0 %v948_v56 }
 0x273   : > { %1293 = vrot.lane.b32.xlu0 %v2233_v57, %s2349_s4 }
 0x2bd   : > { %v1064_v58 = vpop.xlane.xlu1 %1063 }
 0x2be   : > { %v1065_v59 = vsub.f32 %v1056_v47, %v1064_v58 }
 0x2c0   : > { %v1066_v60 = vmul.f32 1.442695, %v1065_v59 }
 0x2c2   : > { %2248 = vpow2.f32 %v1066_v60  ;;  %v1342_v60 = vld [vmem:[%s2756_s8 + $0x8] sm:$0xf] }
 0x2cf   : > { %v2249_v61 = vpop.eup %2248 }
 0x2d0   : > { %v1068_v62 = vsel %vm895_vm3, %v2249_v61, 0.0 }
 0x2d1   : > { %1069 = vadd.xlane.f32.xlu1 %v1068_v62 }
 0x2e2   : > { %1077 = vrot.lane.b32.xlu1 %v2234_v63, %s2348_s22 }
 0x2e6   : > { %v950_v2 = vpop.xlane.xlu0 %949  ;;  %1230 = vrot.lane.b32.xlu1 %v2235_v0, %s2349_s4 }
 0x2e7   : > { %2250 = vrcp.f32 %v950_v2 }
 0x2ea   : > { %1225 = vrot.lane.b32.xlu1 %v2236_v3, %s2349_s4  ;;  %v1294_v18 = vpop.permute.xlu0 %1293  ;;  %s1953_s4 = sshll.u32 %s646_s1, 3 }
 0x2eb   : > { %v1299_v22 = vsel %vm957_vm4, %v1294_v18, 0  ;;  %v1513_v18 = vld [vmem:[%s2756_s8 + $0xc] sm:$0xf]  ;;  %s648_s0 = scalar_lea.vmem [#allocation8], %s1953_s4 }
 0x2ec   : > { %s1817_s23 = sshll.u32 %s648_s0, 4  ;;  %s1818_s23 = int_to_ptr.vmem [resolvable:$true] %s1817_s23 }
 0x2ed   : > { %s2268_s21 = scalar_lea.vmem %s1818_s23, 128  ;;  %p2275_p1 = scmp.lt.s32.totalorder %s1818_s23, %s2273_s24 }
 0x2ee   : > { %p2269_p12 = scmp.ne.s32.totalorder %s1818_s23, %s2268_s21 }
 0x2f0   : > { %p2270_p13 = pnand %p2269_p12, %p2487_p4 }
 0x2f2   : > { %p2271_p0 = pneg %p2270_p13 }
 0x2f4   : > { %v2251_v4 = vpop.eup %2250 }
 0x2f5   : > { %v952_v5 = vmul.f32 %v2251_v4, %v2247_v55 }
 0x2f7   : > { %v953_v7 = vpack.c.bf16 %v952_v5, %v952_v5 }
 0x2f9   : > { %2082 = vmatmul.mubr.msk.bf16.vlgmr.msra.gmra.mxu0 %vm895_vm3, %v953_v7 }
 0x2fa   : > { %2093 = vmatprep.mubr.msk.bf16.mxu0 %vm2347_vm0, %v2346_v1 }
 0x35a   : > { %v1070_v10 = vpop.xlane.xlu1 %1069 }
 0x35b   : > { %2252 = vrcp.f32 %v1070_v10 }
 0x35e   : > { %v1078_v11 = vpop.permute.xlu1 %1077 }
 0x35f   : > { %v1083_v12 = vsel %vm957_vm4, %v1078_v11, 0 }
 0x360   : > { %2092 = vmatpush3.bf16.msra.mxu0 %v1083_v12 }
 0x361   : > { %2103 = vmatprep.subr.bf16.mxu0 %v2346_v1 }
 0x362   : > { %v1231_v25 = vpop.permute.xlu1 %1230 }
 0x363   : > { %v1236_v29 = vsel %vm895_vm3, %v1231_v25, 0 }
 0x366   : > { %v1226_v32 = vpop.permute.xlu1 %1225 }
 0x368   : > { %v2253_v13 = vpop.eup %2252 }
 0x369   : > { %v1072_v15 = vmul.f32 %v2253_v13, %v2249_v61  ;;  %v1347_v61 = vsel %vm957_vm4, %v1342_v60, 0 }
 0x36b   : > { %v1073_v16 = vpack.c.bf16 %v1072_v15, %v1072_v15  ;;  %v2239_v15 = vld [vmem:[#allocation3] ss:$0 sps:$4 sm:$0xff]  }
 0x36d   : > { %2094 = vmatmul.mubr.msk.bf16.vlgmr.msra.gmra.mxu0 %vm895_vm3, %v1073_v16 }
 0x36e   : > { %2104 = vmatpush3.bf16.msra.mxu0 %v1177_v17  ;;  %2105 = vmatprep.mubr.msk.bf16.mxu0 %vm2347_vm0, %v2346_v1 }
 0x36f   : > { %2115 = vmatprep.subr.bf16.mxu0 %v2346_v1 }
 0x3b9   : > { %v995_v19 = vpop.f32.mrf.mxu0 }
 0x3ba   : > { %v1001_v20 = vpack.c.bf16 %v995_v19, %v995_v19 }
 0x3bb   : > { %v2083_v21 = vpop.f32.mrf.mxu0 }
 0x3bc   : > { %2106 = vmatmul.mubr.msk.bf16.vlgmr.msra.gmra.mxu0 %vm895_vm3, %v1001_v20  ;;  %v1518_v20 = vsel %vm957_vm4, %v1513_v18, 0 }
 0x3bd   : > { %2116 = vmatpush3.bf16.msra.mxu0 %v1299_v22  ;;  %v998_v23 = vpop.f32.mrf.mxu0  ;;  %2117 = vmatprep.mubr.msk.bf16.mxu0 %vm2347_vm0, %v2346_v1 }
 0x3be   : > { %2127 = vmatprep.subr.bf16.mxu0 %v2346_v1 }
 0x3bf   : > { %v2084_v24 = vpop.f32.mrf.mxu0 }
 0x42d   : > { %v1119_v26 = vpop.f32.mrf.mxu0 }
 0x42e   : > { %v1125_v27 = vpack.c.bf16 %v1119_v26, %v1119_v26 }
 0x42f   : > { %v2095_v28 = vpop.f32.mrf.mxu0 }
 0x430   : > { %2100 = vmatmul.mubr.msk.bf16.vlgmr.msra.gmra.mxu1 %vm895_vm3, %v1125_v27 }
 0x431   : > { %2110 = vmatpush3.bf16.xpose.msra.mxu1 %v1236_v29  ;;  %v1122_v30 = vpop.f32.mrf.mxu0  ;;  %2111 = vmatprep.mubr.msk.bf16.mxu1 %vm2347_vm0, %v2346_v1 }
 0x432   : > { %2121 = vmatprep.subr.bf16.mxu1 %v2346_v1 }
 0x433   : > { %v2096_v31 = vpop.f32.mrf.mxu0 }
 0x438   : > { %2112 = vmatmul.mubr.msk.bf16.vlgmr.msra.gmra.mxu1 %vm895_vm3, %v1226_v32 }
 0x439   : > { %2123 = vmatprep.mubr.msk.bf16.mxu1 %vm2347_vm0, %v2346_v1  ;;  %2122 = vmatpush3.bf16.msra.mxu1 %v1347_v61  ;;  %v2242_v61 = vld [vmem:[%s2762_s14 + $0x18] sm:$0xff]  }
 0x43a   : > { %2133 = vmatprep.subr.bf16.mxu1 %v2346_v1 }
 0x47c   : > { %v2617_v33 = vpop.f32.mrf.mxu0 }
 0x47e   : > { %v2107_v34 = vpop.f32.mrf.mxu0 }
 0x480   : > { %v1216_v35 = vpop.f32.mrf.mxu0 }
 0x482   : > { %v2108_v36 = vpop.f32.mrf.mxu0 }
 0x483   : > { %v1989_v36 = vld [vmem:[%s2757_s9] ss:$0 sm:$0xff] }
 0x4f0   : > { %v1167_v37 = vpop.f32.mrf.mxu1 }
 0x4f1   : > { %v1214_v16 = vadd.f32 %v2617_v33, %v1167_v37 }
 0x4f2   : > { %v2101_v38 = vpop.f32.mrf.mxu1 }
 0x4f4   : > { %v1170_v39 = vpop.f32.mrf.mxu1 }
 0x4f6   : > { %v2102_v40 = vpop.f32.mrf.mxu1 }
 0x4f8   : > { %v1272_v41 = vpop.f32.mrf.mxu1 }
 0x4f9   : > { %v1278_v42 = vsel %vm895_vm3, %v1272_v41, -inf }
 0x4fa   : > { %1279 = vmax.xlane.f32.xlu1 %v1278_v42  ;;  %v2113_v43 = vpop.f32.mrf.mxu1 }
 0x4fc   : > { %v1275_v44 = vpop.f32.mrf.mxu1 }
 0x4fe   : > { %v2114_v45 = vpop.f32.mrf.mxu1 }
 0x583   : > { %v1280_v46 = vpop.xlane.xlu1 %1279 }
 0x584   : > { %v1281_v47 = vsub.f32 %v1272_v41, %v1280_v46 }
 0x586   : > { %v1282_v48 = vmul.f32 1.442695, %v1281_v47 }
 0x588   : > { %2254 = vpow2.f32 %v1282_v48 }
 0x595   : > { %v2255_v49 = vpop.eup %2254 }
 0x596   : > { %v1284_v50 = vsel %vm895_vm3, %v2255_v49, 0.0 }
 0x597   : > { %1285 = vadd.xlane.f32.xlu0 %v1284_v50 }
 0x5ad   : > { %1401 = vrot.lane.b32.xlu0 %v2237_v51, %s2350_s20 }
 0x5b1   : > { %1396 = vrot.lane.b32.xlu0 %v2238_v52, %s2350_s20 }
 0x620   : > { %v1286_v53 = vpop.xlane.xlu0 %1285 }
 0x621   : > { %2256 = vrcp.f32 %v1286_v53 }
 0x624   : > { %v1402_v56 = vpop.permute.xlu0 %1401 }
 0x625   : > { %v1407_v58 = vsel %vm895_vm3, %v1402_v56, 0  ;;  %v1991_v56 = vld [vmem:[%s2759_s11] ss:$0 sm:$0xff] }
 0x628   : > { %v1397_v59 = vpop.permute.xlu0 %1396 }
 0x62e   : > { %v2257_v54 = vpop.eup %2256 }
 0x62f   : > { %v1288_v55 = vmul.f32 %v2257_v54, %v2255_v49  ;;  %v2240_v49 = vld [vmem:[%s2760_s12 + $0x8] sm:$0xff]   ;;  %v1990_v54 = vld [vmem:[%s2758_s10] ss:$0 sm:$0xff] }
 0x631   : > { %v1289_v57 = vpack.c.bf16 %v1288_v55, %v1288_v55 }
 0x633   : > { %2118 = vmatmul.mubr.msk.bf16.vlgmr.msra.gmra.mxu0 %vm895_vm3, %v1289_v57 }
 0x634   : > { %2128 = vmatpush3.bf16.xpose.msra.mxu0 %v1407_v58  ;;  %2129 = vmatprep.mubr.msk.bf16.mxu0 %vm2347_vm0, %v2346_v1 }
 0x635   : > { %2139 = vmatprep.subr.bf16.mxu0 %v2346_v1 }
 0x63b   : > { %2130 = vmatmul.mubr.msk.bf16.vlgmr.msra.gmra.mxu0 %vm895_vm3, %v1397_v59 }
 0x63c   : > { %2141 = vmatprep.mubr.msk.bf16.mxu0 %vm2347_vm0, %v2346_v1  ;;  %2140 = vmatpush3.bf16.msra.mxu0 %v1518_v20  ;;  %v2001_v20 = vld [vmem:[%s2763_s15] ss:$0 sm:$0xff] }
 0x63d   : > { %2153 = vmatprep.subr.bf16.mxu0 %v2346_v1 }
 0x6f3   : > { %v1335_v62 = vpop.f32.mrf.mxu0 }
 0x6f4   : > { %v1341_v63 = vpack.c.bf16 %v1335_v62, %v1335_v62  ;;  %v2243_v62 = vld [vmem:[%s2762_s14 + $0x10] sm:$0xff]  }
 0x6f5   : > { %v2119_v0 = vpop.f32.mrf.mxu0 }
 0x6f6   : > { %2124 = vmatmul.mubr.msk.bf16.vlgmr.msra.gmra.mxu1 %vm895_vm3, %v1341_v63  ;;  %v2244_v63 = vld [vmem:[%s2762_s14 + $0x8] sm:$0xff]   ;;  %v2245_v0 = vld [vmem:[%s2762_s14] sm:$0xff]  }
 0x6f7   : > { %v1338_v2 = vpop.f32.mrf.mxu0  ;;  %2135 = vmatprep.mubr.msk.bf16.mxu1 %vm2347_vm0, %v2346_v1 }
 0x6f8   : > { %v1992_v2 = vld [vmem:[%s2761_s13] ss:$0 sm:$0xff] }
 0x6f9   : > { %v2120_v3 = vpop.f32.mrf.mxu0 }
 0x6fb   : > { %v1443_v4 = vpop.f32.mrf.mxu0 }
 0x6fc   : > { %v1449_v5 = vsel %vm895_vm3, %v1443_v4, -inf }
 0x6fd   : > { %1450 = vmax.xlane.f32.xlu0 %v1449_v5  ;;  %v2131_v7 = vpop.f32.mrf.mxu0 }
 0x6ff   : > { %v1446_v8 = vpop.f32.mrf.mxu0 }
 0x701   : > { %v2132_v9 = vpop.f32.mrf.mxu0 }
 0x786   : > { %v1451_v10 = vpop.xlane.xlu0 %1450 }
 0x787   : > { %v1452_v11 = vsub.f32 %v1443_v4, %v1451_v10 }
 0x789   : > { %v1453_v12 = vmul.f32 1.442695, %v1452_v11 }
 0x78b   : > { %2258 = vpow2.f32 %v1453_v12 }
 0x798   : > { %v2259_v13 = vpop.eup %2258 }
 0x799   : > { %v1455_v14 = vsel %vm895_vm3, %v2259_v13, 0.0 }
 0x79a   : > { %1456 = vadd.xlane.f32.xlu1 %v1455_v14  ;;  %v1677_v14 = vld [vmem:[#allocation7] sm:$0xff] }
 0x7ab   : > { %1464 = vrot.lane.b32.xlu1 %v2239_v15, %s2350_s20  ;;  %s2005_s20 = sshll.u32 %s2336_s30, 7  ;;  %s2274_s30 = scalar_lea.vmem %s2273_s24, 256 }
 0x7ac   : > { %s1815_s3 = scalar_lea.hbm %s2766_s18, %s2005_s20  ;;  %p2276_p2 = scmp.lt.s32.totalorder %s2274_s30, %s2268_s21 }
 0x7ae   : > { %p2277_p3 = por %p2276_p2, %p2275_p1 }
 0x7b0   : > { %p2278_p5 = pnand %p2277_p3, %p2271_p0 }
 0x7b6   : > { %v1383_v17 = vpop.f32.mrf.mxu1 }
 0x7b7   : > { %v1389_v19 = vadd.f32 %v1383_v17, %v1214_v16 }
 0x7b8   : > { %v2125_v21 = vpop.f32.mrf.mxu1 }
 0x7ba   : > { %v1386_v22 = vpop.f32.mrf.mxu1 }
 0x7bc   : > { %v2126_v23 = vpop.f32.mrf.mxu1 }
 0x823   : > { %v1457_v24 = vpop.xlane.xlu1 %1456 }
 0x824   : > { %2260 = vrcp.f32 %v1457_v24 }
 0x827   : > { %v1465_v25 = vpop.permute.xlu1 %1464 }
 0x828   : > { %v1470_v26 = vsel %vm957_vm4, %v1465_v25, 0 }
 0x829   : > { %2134 = vmatpush3.bf16.msra.mxu1 %v1470_v26 }
 0x82a   : > { %2145 = vmatprep.subr.bf16.mxu1 %v2346_v1 }
 0x831   : > { %v2261_v27 = vpop.eup %2260 }
 0x832   : > { %v1459_v28 = vmul.f32 %v2261_v27, %v2259_v13 }
 0x834   : > { %v1460_v29 = vpack.c.bf16 %v1459_v28, %v1459_v28 }
 0x836   : > { %2136 = vmatmul.mubr.msk.bf16.vlgmr.msra.gmra.mxu1 %vm895_vm3, %v1460_v29 }
 0x837   : > { %2149 = vmatprep.mubr.msk.bf16.mxu1 %vm2347_vm0, %v2346_v1  ;;  %2146 = vmatpush3.bf16.msra.mxu1 %v2240_v49 }
 0x838   : > { %2147 = vmatprep.subr.bf16.mxu1 %v2346_v1 }
 0x8f6   : > { %v1506_v30 = vpop.f32.mrf.mxu1 }
 0x8f7   : > { %v1512_v31 = vpack.c.bf16 %v1506_v30, %v1506_v30 }
 0x8f8   : > { %v2137_v32 = vpop.f32.mrf.mxu1 }
 0x8f9   : > { %2142 = vmatmul.mubr.msk.bf16.vlgmr.msra.gmra.mxu0 %vm895_vm3, %v1512_v31 }
 0x8fa   : > { %v1509_v33 = vpop.f32.mrf.mxu1  ;;  %2161 = vmatprep.mubr.msk.bf16.mxu0 %vm2347_vm0, %v2346_v1  ;;  %2154 = vmatpush3.bf16.msra.mxu0 %v2242_v61 }
 0x8fb   : > { %2155 = vmatprep.subr.bf16.mxu0 %v2346_v1 }
 0x8fc   : > { %v2138_v34 = vpop.f32.mrf.mxu1 }
 0x8fe   : > { %2156 = vmatpush3.bf16.msra.mxu0 %v2243_v62 }
 0x8ff   : > { %2157 = vmatprep.subr.bf16.mxu0 %v2346_v1 }
 0x902   : > { %2158 = vmatpush3.bf16.msra.mxu0 %v2244_v63 }
 0x903   : > { %2159 = vmatprep.subr.bf16.mxu0 %v2346_v1 }
 0x906   : > { %2160 = vmatpush3.bf16.msra.mxu0 %v2245_v0 }
 0x9b9   : > { %v1554_v35 = vpop.f32.mrf.mxu0 }
 0x9ba   : > { %v1560_v37 = vadd.f32 %v1554_v35, %v1389_v19  ;;  %v2002_v35 = vld [vmem:[%s2764_s16] ss:$0 sm:$0xff] }
 0x9bb   : > { %v2143_v38 = vpop.f32.mrf.mxu0 }
 0x9bc   : > { %v1568_v39 = vadd.f32 %v1989_v36, %v1560_v37  ;;  %v2003_v37 = vld [vmem:[%s2765_s17] ss:$0 sm:$0xff] }
 0x9bd   : > { %v1557_v40 = vpop.f32.mrf.mxu0 }
 0x9be   : > { %v1569_v41 = vadd.f32 %v1568_v39, %v2533_v6  ;;  %v2241_v6 = vld [vmem:[%s2760_s12] sm:$0xff]  }
 0x9bf   : > { %v2144_v42 = vpop.f32.mrf.mxu0  ;;  %2148 = vmatpush3.bf16.msra.mxu1 %v2241_v6 }
 0x9c0   : > { %v1572_v43 = vsel %vm704_vm1, %v1569_v41, 0.0 }
 0x9c1   : > { %1573 = vadd.xlane.f32.xlu1 %v1572_v43 }
 0xa4a   : > { %v1574_v44 = vpop.xlane.xlu1 %1573 }
 0xa4b   : > { %v1576_v45 = vmul.f32 0.03125, %v1574_v44 }
 0xa4d   : > { %v1577_v46 = vsub.f32 %v1569_v41, %v1576_v45 }
 0xa4f   : > { %v1578_v47 = vmul.f32 %v1577_v46, %v1577_v46 }
 0xa51   : > { %v1579_v48 = vsel %vm704_vm1, %v1578_v47, 0.0 }
 0xa52   : > { %1580 = vadd.xlane.f32.xlu0 %v1579_v48 }
 0xadb   : > { %v1581_v50 = vpop.xlane.xlu0 %1580 }
 0xadc   : > { %v1582_v51 = vmul.f32 0.03125, %v1581_v50 }
 0xade   : > { %v1583_v52 = vadd.f32 1e-12, %v1582_v51 }
 0xae0   : > { %2262 = vrsqrt.f32 %v1583_v52 }
 0xaed   : > { %v2263_v53 = vpop.eup %2262 }
 0xaee   : > { %v1585_v55 = vmul.f32 %v2263_v53, %v1577_v46 }
 0xaf0   : > { %v1592_v57 = vmul.f32 %v1990_v54, %v1585_v55 }
 0xaf2   : > { %v1599_v58 = vadd.f32 %v1991_v56, %v1592_v57 }
 0xaf4   : > { %1600 = vst.msk [vmem:[#allocation5] sm:$0xff] %vm704_vm1, %v1599_v58  ;;  %v1601_v59 = vpack.c.bf16 %v1599_v58, %v1599_v58 }
 0xaf6   : > { %1602 = vst.msk [vmem:[#allocation6] sm:$0xf] %vm812_vm2, %v1601_v59 }
 0xafb   : > { %v1769_v23 = vld [vmem:[#allocation5] sm:$0xff] }
 0xafd   : > { %v1604_v60 = vld [vmem:[#allocation6] sm:$0xf] }
 0xafe   : > { %2150 = vmatmul.mubr.msk.bf16.vlgmr.msra.gmra.mxu1 %vm704_vm1, %v1604_v60 }
 0xbbe   : > { %v1666_v3 = vpop.f32.mrf.mxu1 }
 0xbbf   : > { %v1667_v4 = vadd.f32 %v1992_v2, %v1666_v3 }
 0xbc0   : > { %v2151_v5 = vpop.f32.mrf.mxu1 }
 0xbc1   : > { %v1673_v7 = vmul.f32 0.70710677, %v1667_v4  ;;  %v1672_v11 = vmul.f32 0.5, %v1667_v4 }
 0xbc2   : > { %v1669_v8 = vpop.f32.mrf.mxu1 }
 0xbc3   : > { %2264 = verf.f32 %v1673_v7 }
 0xbc4   : > { %v2152_v9 = vpop.f32.mrf.mxu1 }
 0xbd0   : > { %v2265_v10 = vpop.eup %2264 }
 0xbd1   : > { %v1675_v12 = vadd.f32 1.0, %v2265_v10 }
 0xbd3   : > { %v1676_v1 = vmul.f32 %v1675_v12, %v1672_v11 }
 0xbd5   : > { %v1678_v13 = vpack.c.bf16 %v1676_v1, %v1676_v1 }
 0xbd7   : > { %2162 = vmatmul.mubr.msk.bf16.vlgmr.msra.gmra.mxu0 %vm1711_vm5, %v1678_v13 }
 0xc97   : > { %v1749_v15 = vpop.f32.mrf.mxu0 }
 0xc98   : > { %v1755_v16 = vadd.f32 %v1749_v15, %v1677_v14 }
 0xc99   : > { %v2163_v17 = vpop.f32.mrf.mxu0 }
 0xc9a   : > { %1756 = vst.msk [vmem:[#allocation7] sm:$0xff] %vm704_vm1, %v1755_v16 }
 0xc9b   : > { %v1752_v18 = vpop.f32.mrf.mxu0 }
 0xc9d   : > { %v2164_v19 = vpop.f32.mrf.mxu0 }
 0xca1   : > { %v1760_v21 = vld [vmem:[#allocation7] sm:$0xff] }
 0xca2   : > { %v1768_v22 = vadd.f32 %v2001_v20, %v1760_v21 }
 0xca4   : > { %v1770_v24 = vadd.f32 %v1769_v23, %v1768_v22 }
 0xca6   : > { %v1773_v25 = vsel %vm704_vm1, %v1770_v24, 0.0 }
 0xca7   : > { %1774 = vadd.xlane.f32.xlu0 %v1773_v25 }
 0xd30   : > { %v1775_v26 = vpop.xlane.xlu0 %1774 }
 0xd31   : > { %v1777_v27 = vmul.f32 0.03125, %v1775_v26 }
 0xd33   : > { %v1778_v28 = vsub.f32 %v1770_v24, %v1777_v27 }
 0xd35   : > { %v1779_v29 = vmul.f32 %v1778_v28, %v1778_v28 }
 0xd37   : > { %v1780_v30 = vsel %vm704_vm1, %v1779_v29, 0.0 }
 0xd38   : > { %1781 = vadd.xlane.f32.xlu0 %v1780_v30 }
 0xdc1   : > { %v1782_v31 = vpop.xlane.xlu0 %1781 }
 0xdc2   : > { %v1783_v32 = vmul.f32 0.03125, %v1782_v31 }
 0xdc4   : > { %v1784_v33 = vadd.f32 1e-12, %v1783_v32 }
 0xdc6   : > { %2266 = vrsqrt.f32 %v1784_v33 }
 0xdd3   : > { %v2267_v34 = vpop.eup %2266 }
 0xdd4   : > { %v1786_v36 = vmul.f32 %v2267_v34, %v1778_v28 }
 0xdd6   : > { %v1793_v38 = vmul.f32 %v2002_v35, %v1786_v36 }
 0xdd8   : > { %v1800_v39 = vadd.f32 %v2003_v37, %v1793_v38 }
 0xdda   : > { %1801 = vst.msk [vmem:[%s648_s0] sm:$0xff] %vm704_vm1, %v1800_v39 }
 0xddb   : > { %2281 = shalt.err (!%p2278_p5)
}
 0xddc   : > { %s2282_s4 = scalar_lea.hbm %s1815_s3, 128  ;;  %s2286_s20 = scalar_lea.hbm %s2766_s18, 256 }
 0xddd   : > { %p2283_p6 = scmp.ne.s32.totalorder %s1815_s3, %s2282_s4  ;;  %p2287_p10 = scmp.lt.s32.totalorder %s1815_s3, %s2766_s18 }
 0xdde   : > { %p2288_p11 = scmp.lt.s32.totalorder %s2286_s20, %s2282_s4 }
 0xddf   : > { %p2284_p7 = pnand %p2283_p6, %p2487_p4 }
 0xde0   : > { %p2289_p12 = por %p2288_p11, %p2287_p10 }
 0xde1   : > { %p2285_p9 = pneg %p2284_p7 }
 0xde3   : > { %p2290_p13 = pnand %p2289_p12, %p2285_p9 }
 0xde5   : > { %2293 = shalt.err (!%p2290_p13)
}
 0xde6   : > { %2165 = dma.vmem_to_hbm [thread:$0]  (%p2487_p4), %s1818_s23, 128, %s1815_s3, %s1803_s5  }
 0xde7 PF: > { %p2171_p0 = scmp.ge.s32.totalorder %s2344_s19, 2  ;;  %s1829_s21 = sand.u32 1, %s2324_s27  }
 0xde8   : > { %s1830_s29 = scalar_lea.sflag [#allocation9], %s1829_s21 }
 0xde9   : > { %p2168_p1 = pnand %p2171_p0, %p2494_p8 }
 0xdeb   : > { %p2169_p2 = pneg %p2168_p1 }
 0xded   : > { %2319 = dma.done.wait (%p2169_p2), %s1830_s29, 128  }
 0xdee   : > { %2321 = vsyncadd (%p2169_p2), %s1830_s29, 4294967168  ;;  %s31_s19 = sadd.s32 1, %s2344_s19   ;;  %s2793_s24 = sld [smem:[#allocation11_spill]] }
 0xdef   : > { %p28_p3 = scmp.ge.s32.totalorder %s31_s19, 4   ;;  %s2794_s29 = sld [smem:[#allocation15_spill]] }
 0xdf0   : > { %s2795_s30 = sld [smem:[#allocation12_spill]]  ;;  %s2797_s27 = smov %s2328_s28 }
 0xdf1   : > { %s2796_s0 = sld [smem:[#allocation13_spill]]  ;;  %30 = sbr.rel (!%p28_p3) target bundleno = 11 (0xb), region = 151 }
 0xdf4   : > { %s2798_s28 = smov %s2793_s24 }
 0xdf6   :  { %1835 = vsyncpa [#allocation9], 1 }
 0xdf7   :  { %1837 = vsyncpa [#allocation9 + $0x1], 1 }

</bundles_post_ra>
